<compile_context>
chip_gen: v7x
topology: tpu7x:2x2x1
jax: 0.10.0
libtpu: 0.0.40
codegen_flags: <defaults>
</compile_context>

<pallas_src>
import math

import jax
import jax.numpy as jnp
from jax.experimental import pallas as pl
from jax.experimental.pallas import tpu as pltpu


def _textdec_kernel(x_ref, w1_ref, b1_ref, w2_ref, b2_ref, o_ref):
    # x_ref:  (tm, D_in)  bf16     w1_ref: (D_in, H) bf16   b1_ref: (1, H)     f32
    # w2_ref: (H, D_out)  bf16     b2_ref: (1, D_out) f32   o_ref:  (tm, D_out) f32
    x = x_ref[...]

    # ---- layer 1: Linear + leaky_relu(0.2), f32 accumulation ----
    h = jnp.dot(x, w1_ref[...], preferred_element_type=jnp.float32)        # (tm, H)
    h = h + b1_ref[...]
    h = jnp.maximum(h, 0.2 * h)                                            # leaky_relu

    # ---- layer 2: Linear + leaky_relu(0.2), f32 accumulation ----
    out = jnp.dot(h.astype(w2_ref.dtype), w2_ref[...],
                  preferred_element_type=jnp.float32)                      # (tm, D_out)
    out = out + b2_ref[...]
    out = jnp.maximum(out, 0.2 * out)                                      # leaky_relu

    o_ref[...] = out.astype(o_ref.dtype)


def _round_up(n, m):
    return ((n + m - 1) // m) * m


def _pad_axis(a, axis, multiple):
    size = a.shape[axis]
    pad = (-size) % multiple
    if pad == 0:
        return a                       # no-op: no extra HBM round trip
    widths = [(0, 0)] * a.ndim
    widths[axis] = (0, pad)
    return jnp.pad(a, widths)


def textdec_forward(x, w1, b1, w2, b2, *, tm=128):
    """x: (B, D_in), w1: (D_in, H), b1: (H,), w2: (H, D_out), b2: (D_out,) -> (B, D_out)."""
    B, D_in = x.shape
    H = w1.shape[1]
    D_out = w2.shape[1]
    assert w1.shape == (D_in, H)
    assert b1.shape == (H,)
    assert w2.shape == (H, D_out)
    assert b2.shape == (D_out,)

    out_dtype = x.dtype

    # Row tile: keep >= 2 grid tiles when B allows it (v7x megacore); for tiny
    # demo batches fall back to a single sublane-aligned tile.
    tm_eff = tm if B >= tm else _round_up(B, 8)

    # bf16 compute inputs (f32 accumulation happens in the kernel); biases f32.
    xp = _pad_axis(_pad_axis(x.astype(jnp.bfloat16), 0, tm_eff), 1, 128)
    w1p = _pad_axis(_pad_axis(w1.astype(jnp.bfloat16), 0, 128), 1, 128)
    b1p = _pad_axis(b1.astype(jnp.float32), 0, 128).reshape(1, -1)
    w2p = _pad_axis(_pad_axis(w2.astype(jnp.bfloat16), 0, 128), 1, 128)
    b2p = _pad_axis(b2.astype(jnp.float32), 0, 128).reshape(1, -1)

    Bp, Dip = xp.shape
    Hp = w1p.shape[1]
    Dop = w2p.shape[1]

    flops = 2 * Bp * (Dip * Hp + Hp * Dop)
    bytes_accessed = (
        2 * (Bp * Dip + Dip * Hp + Hp * Dop)        # bf16 x, W1, W2
        + 4 * (Hp + Dop)                            # f32 biases
        + out_dtype.itemsize * Bp * Dop             # output
    )

    resident = lambda i: (0, 0)  # grid-invariant weights/biases

    out = pl.pallas_call(
        _textdec_kernel,
        out_shape=jax.ShapeDtypeStruct((Bp, Dop), out_dtype),
        grid_spec=pltpu.PrefetchScalarGridSpec(
            num_scalar_prefetch=0,
            grid=(Bp // tm_eff,),
            in_specs=[
                # x: streamed batch row tile (default double-buffering).
                pl.BlockSpec((tm_eff, Dip), lambda i: (i, 0)),
                # Weights/biases: resident in VMEM, single-buffered.
                pl.BlockSpec((Dip, Hp), resident, pipeline_mode=pl.Buffered(1)),
                pl.BlockSpec((1, Hp), resident, pipeline_mode=pl.Buffered(1)),
                pl.BlockSpec((Hp, Dop), resident, pipeline_mode=pl.Buffered(1)),
                pl.BlockSpec((1, Dop), resident, pipeline_mode=pl.Buffered(1)),
            ],
            out_specs=pl.BlockSpec((tm_eff, Dop), lambda i: (i, 0)),
        ),
        compiler_params=pltpu.CompilerParams(
            dimension_semantics=("parallel",),
        ),
        cost_estimate=pl.CostEstimate(
            flops=flops, transcendentals=0, bytes_accessed=bytes_accessed),
    )(xp, w1p, b1p, w2p, b2p)

    if Bp != B or Dop != D_out:
        out = out[:B, :D_out]
    return out


def textdec_reference(x, w1, b1, w2, b2):
    h = x @ w1 + b1
    h = jnp.where(h >= 0, h, 0.2 * h)
    o = h @ w2 + b2
    return jnp.where(o >= 0, o, 0.2 * o)


def init_params(key, d_in, d_hid, d_out):
    """Matches torch.nn.Linear default init: U(-1/sqrt(fan_in), +1/sqrt(fan_in))."""
    k1, k2, k3, k4 = jax.random.split(key, 4)
    s1 = 1.0 / math.sqrt(d_in)
    s2 = 1.0 / math.sqrt(d_hid)
    w1 = jax.random.uniform(k1, (d_in, d_hid), jnp.float32, -s1, s1)
    b1 = jax.random.uniform(k2, (d_hid,), jnp.float32, -s1, s1)
    w2 = jax.random.uniform(k3, (d_hid, d_out), jnp.float32, -s2, s2)
    b2 = jax.random.uniform(k4, (d_out,), jnp.float32, -s2, s2)
    return w1, b1, w2, b2


if __name__ == "__main__":
    B = 256
    d_in, d_hid, d_out = 1024, 512, 300   # TextDec defaults

    key = jax.random.PRNGKey(0)
    kx, kp = jax.random.split(key)

    x = jax.random.normal(kx, (B, d_in), jnp.float32)
    w1, b1, w2, b2 = init_params(kp, d_in, d_hid, d_out)

    out = textdec_forward(x, w1, b1, w2, b2, tm=128)
    out = jax.block_until_ready(out)

    ref = textdec_reference(x, w1, b1, w2, b2)
    assert out.shape == (B, d_out), out.shape
    max_err = float(jnp.max(jnp.abs(out - ref)))
    # bf16 inputs/weights with f32 accumulation: expect ~1e-2-level deviation
    # from the f32 reference (documented fast path).
    assert jnp.allclose(out, ref, atol=5e-2, rtol=5e-2), (
        f"mismatch vs reference (max abs err {max_err})")

    print("KERNEL_OK")
</pallas_src>

<mosaic_0001>
module attributes {stable_mosaic.version = 11 : i64} {
  func.func @_textdec_kernel(%arg0: i32, %arg1: memref<128x1024xbf16, #tpu.memory_space<vmem>>, %arg2: memref<1024x512xbf16, #tpu.memory_space<vmem>>, %arg3: memref<1x512xf32, #tpu.memory_space<vmem>>, %arg4: memref<512x384xbf16, #tpu.memory_space<vmem>>, %arg5: memref<1x384xf32, #tpu.memory_space<vmem>>, %arg6: memref<128x384xf32, #tpu.memory_space<vmem>>) attributes {dimension_semantics = [#tpu.dimension_semantics<parallel>], iteration_bounds = array<i64: 2>, scalar_prefetch = 0 : i64, scratch_operands = 0 : i64, tpu.core_type = #tpu.core_type<tc>, window_params = [{transform_indices = @transform_0, window_bounds = array<i64: 128, 1024>}, {pipeline_mode = #tpu.pipeline_mode<synchronous>, transform_indices = @transform_1, window_bounds = array<i64: 1024, 512>}, {pipeline_mode = #tpu.pipeline_mode<synchronous>, transform_indices = @transform_2, window_bounds = array<i64: 1, 512>}, {pipeline_mode = #tpu.pipeline_mode<synchronous>, transform_indices = @transform_3, window_bounds = array<i64: 512, 384>}, {pipeline_mode = #tpu.pipeline_mode<synchronous>, transform_indices = @transform_4, window_bounds = array<i64: 1, 384>}, {transform_indices = @transform_5, window_bounds = array<i64: 128, 384>}]} {
    %c0 = arith.constant 0 : index
    %c0_0 = arith.constant 0 : index
    %0 = vector.load %arg1[%c0, %c0_0] : memref<128x1024xbf16, #tpu.memory_space<vmem>>, vector<128x1024xbf16>
    %c0_1 = arith.constant 0 : index
    %c0_2 = arith.constant 0 : index
    %1 = vector.load %arg2[%c0_1, %c0_2] : memref<1024x512xbf16, #tpu.memory_space<vmem>>, vector<1024x512xbf16>
    %cst = arith.constant dense<0.000000e+00> : vector<128x512xf32>
    %2 = tpu.matmul %0, %1, %cst {dimension_numbers = #tpu.dot_dimension_numbers<[1], [0], [0], [1], [0, 0, 1, 1], [], []>} : vector<128x1024xbf16>, vector<1024x512xbf16>, vector<128x512xf32> -> vector<128x512xf32>
    %c0_3 = arith.constant 0 : index
    %c0_4 = arith.constant 0 : index
    %3 = vector.load %arg3[%c0_3, %c0_4] : memref<1x512xf32, #tpu.memory_space<vmem>>, vector<1x512xf32>
    %4 = vector.broadcast %3 : vector<1x512xf32> to vector<128x512xf32>
    %5 = arith.addf %2, %4 : vector<128x512xf32>
    %cst_5 = arith.constant 2.000000e-01 : f32
    %6 = vector.broadcast %cst_5 : f32 to vector<128x512xf32>
    %7 = arith.mulf %6, %5 : vector<128x512xf32>
    %8 = arith.maximumf %5, %7 : vector<128x512xf32>
    %9 = arith.truncf %8 : vector<128x512xf32> to vector<128x512xbf16>
    %c0_6 = arith.constant 0 : index
    %c0_7 = arith.constant 0 : index
    %10 = vector.load %arg4[%c0_6, %c0_7] : memref<512x384xbf16, #tpu.memory_space<vmem>>, vector<512x384xbf16>
    %cst_8 = arith.constant dense<0.000000e+00> : vector<128x384xf32>
    %11 = tpu.matmul %9, %10, %cst_8 {dimension_numbers = #tpu.dot_dimension_numbers<[1], [0], [0], [1], [0, 0, 1, 1], [], []>} : vector<128x512xbf16>, vector<512x384xbf16>, vector<128x384xf32> -> vector<128x384xf32>
    %c0_9 = arith.constant 0 : index
    %c0_10 = arith.constant 0 : index
    %12 = vector.load %arg5[%c0_9, %c0_10] : memref<1x384xf32, #tpu.memory_space<vmem>>, vector<1x384xf32>
    %13 = vector.broadcast %12 : vector<1x384xf32> to vector<128x384xf32>
    %14 = arith.addf %11, %13 : vector<128x384xf32>
    %cst_11 = arith.constant 2.000000e-01 : f32
    %15 = vector.broadcast %cst_11 : f32 to vector<128x384xf32>
    %16 = arith.mulf %15, %14 : vector<128x384xf32>
    %17 = arith.maximumf %14, %16 : vector<128x384xf32>
    %c0_12 = arith.constant 0 : index
    %c0_13 = arith.constant 0 : index
    %18 = vector.load %arg6[%c0_12, %c0_13] : memref<128x384xf32, #tpu.memory_space<vmem>>, vector<128x384xf32>
    tpu.vector_store %arg6[%c0_12, %c0_13], %17 {strides = array<i32>} : memref<128x384xf32, #tpu.memory_space<vmem>>, vector<128x384xf32>,
    return
  }
  func.func @transform_0(%arg0: i32) -> (i32, i32) {
    %c0_i32 = arith.constant 0 : i32
    %c0_i32_0 = arith.constant 0 : i32
    return %arg0, %c0_i32 : i32, i32
  }
  func.func @transform_1(%arg0: i32) -> (i32, i32) {
    %c0_i32 = arith.constant 0 : i32
    %c0_i32_0 = arith.constant 0 : i32
    %c0_i32_1 = arith.constant 0 : i32
    return %c0_i32, %c0_i32_0 : i32, i32
  }
  func.func @transform_2(%arg0: i32) -> (i32, i32) {
    %c0_i32 = arith.constant 0 : i32
    %c0_i32_0 = arith.constant 0 : i32
    %c0_i32_1 = arith.constant 0 : i32
    return %c0_i32, %c0_i32_0 : i32, i32
  }
  func.func @transform_3(%arg0: i32) -> (i32, i32) {
    %c0_i32 = arith.constant 0 : i32
    %c0_i32_0 = arith.constant 0 : i32
    %c0_i32_1 = arith.constant 0 : i32
    return %c0_i32, %c0_i32_0 : i32, i32
  }
  func.func @transform_4(%arg0: i32) -> (i32, i32) {
    %c0_i32 = arith.constant 0 : i32
    %c0_i32_0 = arith.constant 0 : i32
    %c0_i32_1 = arith.constant 0 : i32
    return %c0_i32, %c0_i32_0 : i32, i32
  }
  func.func @transform_5(%arg0: i32) -> (i32, i32) {
    %c0_i32 = arith.constant 0 : i32
    %c0_i32_0 = arith.constant 0 : i32
    return %arg0, %c0_i32 : i32, i32
  }
}

</mosaic_0001>

<bundles_post_ra>
// kernel: tpu_custom_call.1
= control target key start
LH: loop header
LB: loop body
LE: loop exit
PB: predicated region body
PF: predicated region fallthrough
CT: control target
= control target key end

     0   :  { %10 = vsyncpa [#allocation3], 0  ;;  %s6932_s0 = inlined_call_operand.hbm [shape: bf16[256,1024], index: 0, kind: input, shape index: {}]   ;;  %s6933_s1 = inlined_call_operand.hbm [shape: bf16[1024,512], index: 1, kind: input, shape index: {}]   ;;  %s6934_s2 = inlined_call_operand.vmem [shape: f32[1,512], index: 2, kind: input, shape index: {}]   ;;  %s6935_s3 = inlined_call_operand.hbm [shape: bf16[512,384], index: 3, kind: input, shape index: {}]   ;;  %s6936_s4 = inlined_call_operand.vmem [shape: f32[1,384], index: 4, kind: input, shape index: {}]   ;;  %s6937_s5 = inlined_call_operand.hbm [shape: f32[256,384], index: 5, kind: output, shape index: {}]  }
   0x1   :  { %12 = vsyncpa [#allocation3 + $0x1], 0 }
   0x2   :  { %13 = vsyncpa [#allocation6], 0 }
   0x3   :  { %14 = vsyncpa [#allocation4], 0 }
   0x4   :  { %16 = vsyncpa [#allocation4 + $0x1], 0  ;;  %s6283_s18 = smov 0   ;;  %s6285_s19 = smov 0  }
   0x5   :  { %s6287_s20 = smov 0   ;;  %s6289_s21 = smov 0  }
   0x6 LB: > { %s6304_s22 = sadd.s32 4294967295, %s6239_s21   ;;  %s4610_s23 = sadd.s32 4294967294, %s6239_s21   ;;  %s6239_s21 = sphi %s6289_s21, %s6957_s21   ;;  %s6235_s20 = sphi %s6287_s20, %s6956_s20   ;;  %s6231_s19 = sphi %s6285_s19, %s6955_s19   ;;  %s6227_s18 = sphi %s6283_s18, %s6954_s18  }
   0x7   : > { %p42_p0 = scmp.ne.s32.totalorder %s6231_s19, %s6227_s18  ;;  %p6938_p1 = scmp.eq.s32.totalorder %s6304_s22, 0 }
   0x8   : > { %p156_p3 = scmp.eq.s32.totalorder %s4610_s23, 1  ;;  %p4611_p5 = scmp.ge.s32.totalorder %s6239_s21, 1 }
   0x9   : > { %p6313_p4 = por %p6938_p1, %p42_p0  ;;  %p163_p7 = scmp.lt.s32.totalorder %s6239_s21, 3 }
   0xa   : > { %p6318_p6 = por %p156_p3, %p42_p0  ;;  %s6241_s27 = smov [#allocation5]  }
   0xb   : > { %s6941_s24 = scalar_select %p6313_p4, 1, 0 }
   0xc   : > { %s6942_s25 = scalar_select %p6318_p6, 1, 0 }
   0xd   : > { %p6323_p8 = pnand %p4611_p5, %p163_p7  ;;  %s175_s28 = sshll.u32 %s6241_s27, 4  ;;  %s6327_s28 = int_to_ptr.vmem [resolvable:$true] %s175_s28 }
   0xe   : > { %s6242_s30 = smov [#allocation7]   ;;  %s6083_s9 = scalar_lea.hbm %s6933_s1, 32768 }
   0xf   : > { %p5508_p9 = pneg %p6323_p8  ;;  %s191_s6 = sshll.u32 %s6242_s30, 4  ;;  %s6338_s6 = int_to_ptr.vmem [resolvable:$true] %s191_s6 }
  0x10   : > { %p6084_p12 = scmp.ne.s32.totalorder %s6933_s1, %s6083_s9  ;;  %p6090_p5 = scmp.lt.u32.totalorder %s6083_s9, %s6933_s1 }
  0x11   : > { %p6334_p11 = pnand %p5508_p9, %p6938_p1 }
  0x13   : > { %p6085_p13 = pneg %p6334_p11 }
  0x15   : > { %p6086_p0 = pnand %p6085_p13, %p6084_p12 }
  0x17   : > { %p6087_p3 = pneg %p6086_p0 }
  0x19   : > { %p6092_p7 = pnand %p6090_p5, %p6087_p3 }
  0x1b   : > { %6095 = shalt.err (!%p6092_p7)
}
  0x1c   : > { %s6096_s14 = scalar_lea.vmem %s6327_s28, 32768  ;;  %p6104_p2 = scmp.lt.s32.totalorder %s6327_s28, %s6327_s28 }
  0x1d   : > { %p6097_p9 = scmp.ne.s32.totalorder %s6327_s28, %s6096_s14  ;;  %p6105_p12 = scmp.lt.s32.totalorder %s6096_s14, %s6096_s14 }
  0x1f   : > { %p6099_p10 = pnand %p6097_p9, %p6085_p13  ;;  %p6106_p0 = por %p6105_p12, %p6104_p2 }
  0x21   : > { %p6100_p1 = pneg %p6099_p10 }
  0x23   : > { %p6107_p6 = pnand %p6106_p0, %p6100_p1 }
  0x25   : > { %6110 = shalt.err (!%p6107_p6)
}
  0x26   : > { %s6243_s15 = smov 256   ;;  %s6244_s16 = smov 16  }
  0x27   : > { %5511 = dma.hbm_to_vmem [thread:$0]  (!%p6334_p11), %s6933_s1, 32768, %s6327_s28, [#allocation6], %s6243_s15, %s6243_s15, %s6244_s16  }
  0x28   : > { %s6111_s7 = scalar_lea.hbm %s6935_s3, 12288 }
  0x29   : > { %p6112_p2 = scmp.ne.s32.totalorder %s6935_s3, %s6111_s7  ;;  %p6118_p10 = scmp.lt.u32.totalorder %s6111_s7, %s6935_s3 }
  0x2b   : > { %p6114_p1 = pnand %p6112_p2, %p6085_p13 }
  0x2d   : > { %p6115_p6 = pneg %p6114_p1 }
  0x2f   : > { %p6120_p3 = pnand %p6118_p10, %p6115_p6 }
  0x31   : > { %6123 = shalt.err (!%p6120_p3)
}
  0x32   : > { %s6124_s28 = scalar_lea.vmem %s6338_s6, 12288  ;;  %p6132_p12 = scmp.lt.s32.totalorder %s6338_s6, %s6338_s6 }
  0x33   : > { %p6125_p5 = scmp.ne.s32.totalorder %s6338_s6, %s6124_s28  ;;  %p6133_p0 = scmp.lt.s32.totalorder %s6124_s28, %s6124_s28 }
  0x35   : > { %p6127_p7 = pnand %p6125_p5, %p6085_p13  ;;  %p6134_p2 = por %p6133_p0, %p6132_p12 }
  0x37   : > { %p6128_p9 = pneg %p6127_p7 }
  0x39   : > { %p6135_p1 = pnand %p6134_p2, %p6128_p9 }
  0x3b   : > { %6138 = shalt.err (!%p6135_p1)
}
  0x3c   : > { %s6245_s12 = smov 192   ;;  %s6246_s13 = smov 12  }
  0x3d   : > { %5514 = dma.hbm_to_vmem [thread:$0]  (!%p6334_p11), %s6935_s3, 12288, %s6338_s6, [#allocation6], %s6245_s12, %s6245_s12, %s6246_s13  }
  0x3e   : > { %s6393_s16 = sadd.s32 1, %s6239_s21   ;;  %s29_s23 = sadd.s32 1, %s6235_s20 }
  0x3f   : > { %s26_s17 = ssub.s32 %s6239_s21, %s6393_s16  ;;  %p36_p6 = scmp.ne.s32.totalorder %s6235_s20, %s6231_s19 }
  0x40   : > { %p27_p13 = scmp.eq.s32.totalorder %s26_s17, 0  ;;  %p37_p10 = scmp.eq.s32.totalorder %s6239_s21, 0 }
  0x41   : > { %p6945_p5 = scmp.eq.s32.totalorder %s6304_s22, 1  ;;  %p5525_p9 = scmp.lt.s32.totalorder %s6239_s21, 2 }
  0x42   : > { %s6402_s27 = scalar_select %p27_p13, %s6235_s20, %s29_s23  }
  0x43   : > { %p38_p3 = por %p37_p10, %p36_p6  ;;  %p6406_p7 = por %p6945_p5, %p36_p6 }
  0x44   : > { %s208_s29 = sand.u32 1, %s6235_s20   ;;  %s5045_s6 = sshll.u32 %s6239_s21, 13 }
  0x45   : > { %s6946_s30 = scalar_select %p6406_p7, 1, 0 }
  0x46   : > { %s4615_s7 = sshll.u32 %s208_s29, 9  ;;  %s6416_s10 = scalar_lea.hbm %s6932_s0, %s5045_s6 }
  0x47   : > { %s212_s11 = scalar_lea.vmem [#allocation2], %s4615_s7  ;;  %p6420_p11 = pnand %p5525_p9, %p38_p3 }
  0x48   : > { %s220_s28 = sshll.u32 %s212_s11, 4  ;;  %s6424_s13 = scalar_lea.sflag [#allocation3], %s208_s29  ;;  %s6418_s28 = int_to_ptr.vmem [resolvable:$true] %s220_s28 }
  0x49   : > { %s6139_s14 = scalar_lea.hbm %s6416_s10, 8192  ;;  %p6141_p0 = pneg %p6420_p11 }
  0x4a   : > { %p6140_p12 = scmp.ne.s32.totalorder %s6416_s10, %s6139_s14  ;;  %s6144_s23 = scalar_lea.hbm %s6932_s0, 16384 }
  0x4b   : > { %p6145_p13 = scmp.lt.u32.totalorder %s6416_s10, %s6932_s0  ;;  %p6146_p6 = scmp.lt.u32.totalorder %s6144_s23, %s6139_s14 }
  0x4c   : > { %p6142_p2 = pnand %p6141_p0, %p6140_p12  ;;  %p6148_p3 = scmp.lt.u32.totalorder %s6139_s14, %s6416_s10 }
  0x4d   : > { %p6147_p10 = por %p6146_p6, %p6145_p13 }
  0x4e   : > { %p6143_p1 = pneg %p6142_p2 }
  0x4f   : > { %p6149_p5 = por %p6148_p3, %p6147_p10 }
  0x51   : > { %p6150_p9 = pnand %p6149_p5, %p6143_p1 }
  0x53   : > { %6153 = shalt.err (!%p6150_p9)
}
  0x54   : > { %s6154_s29 = scalar_lea.vmem %s6418_s28, 8192  ;;  %s6247_s8 = smov [#allocation2]  }
  0x55   : > { %p6155_p12 = scmp.ne.s32.totalorder %s6418_s28, %s6154_s29  ;;  %s6159_s9 = sshll.u32 %s6247_s8, 4  ;;  %s6160_s9 = int_to_ptr.vmem [resolvable:$false] %s6159_s9 }
  0x56   : > { %s6161_s11 = scalar_lea.vmem %s6160_s9, 16384  ;;  %p6162_p4 = scmp.lt.s32.totalorder %s6418_s28, %s6160_s9 }
  0x57   : > { %p6157_p2 = pnand %p6155_p12, %p6141_p0  ;;  %p6163_p13 = scmp.lt.s32.totalorder %s6161_s11, %s6154_s29 }
  0x59   : > { %p6158_p7 = pneg %p6157_p2  ;;  %p6164_p6 = por %p6163_p13, %p6162_p4 }
  0x5b   : > { %p6165_p10 = pnand %p6164_p6, %p6158_p7 }
  0x5d   : > { %6168 = shalt.err (!%p6165_p10)
}
  0x5e   : > { %s6248_s14 = smov 512   ;;  %s6249_s15 = smov 32  }
  0x5f   : > { %5518 = dma.hbm_to_vmem [thread:$0]  (!%p6420_p11), %s6416_s10, 8192, %s6418_s28, %s6424_s13, %s6248_s14, %s6248_s14, %s6249_s15  }
  0x60   : > { %232 = sbr.rel (%p6323_p8) target bundleno = 946 (0x3b2), region = 40  ;;  %s6455_s17 = sand.u32 (!%p6323_p8), 1, %s6231_s19  }
  0x61   : > { %s4620_s23 = sshll.u32 (!%p6323_p8), %s6455_s17, 9  ;;  %s235_s7 = scalar_lea.sflag (!%p6323_p8), [#allocation3], %s6455_s17 }
  0x62   : > { %s6459_s6 = scalar_lea.vmem (!%p6323_p8), [#allocation2], %s4620_s23  ;;  %p6948_p4 = scmp.ne.s32.totalorder (!%p6323_p8), %s6941_s24, 0 }
  0x67   : > { %6214 = dma.done.wait (%p6948_p4), %s235_s7, 8192  }
  0x68   : > { %6216 = vsyncadd (%p6948_p4), %s235_s7, 4294959104  ;;  %p6949_p7 = scmp.eq.s32.totalorder %s6304_s22, 0 }
  0x6a   : > { %6218 = dma.done.wait (%p6949_p7), [#allocation6], 45056   ;;  %p6950_p8 = pmov %p6949_p7 }
  0x6b   : > { %v5571_v0 = vld [vmem:[#allocation5 + $0x4] ss:$16 sps:$4 sm:$0xff]   ;;  %v5573_v1 = vld [vmem:[#allocation5 + $0xc] ss:$16 sps:$4 sm:$0xff]   ;;  %v5575_v2 = vld [vmem:[#allocation5] ss:$16 sps:$4 sm:$0xff]  }
  0x6c   : > { %6220 = vsyncadd (%p6950_p8), [#allocation6], 4294922240  ;;  %2218 = vmatprep.subr.bf16.mxu0 %v5571_v0  ;;  %v5576_v3 = vld [vmem:[#allocation5 + $0x8] ss:$16 sps:$4 sm:$0xff]   ;;  %2670 = vmatprep.subr.bf16.mxu1 %v5573_v1  ;;  %v5577_v4 = vld [vmem:[#allocation5 + $0x24] ss:$16 sps:$4 sm:$0xff]  }
  0x6d   : > { %2219 = vmatpush1.bf16.msra.mxu0 %v5575_v2  ;;  %2671 = vmatpush1.bf16.msra.mxu1 %v5576_v3  ;;  %v5579_v5 = vld [vmem:[#allocation5 + $0x2c] ss:$16 sps:$4 sm:$0xff]   ;;  %v5581_v6 = vld [vmem:[#allocation5 + $0x20] ss:$16 sps:$4 sm:$0xff]   ;;  %v5582_v7 = vld [vmem:[#allocation5 + $0x28] ss:$16 sps:$4 sm:$0xff]  }
  0x6e   : > { %2220 = vmatprep.subr.bf16.mxu0 %v5577_v4  ;;  %2672 = vmatprep.subr.bf16.mxu1 %v5579_v5  ;;  %v5583_v8 = vld [vmem:[#allocation5 + $0x44] ss:$16 sps:$4 sm:$0xff]   ;;  %v5585_v9 = vld [vmem:[#allocation5 + $0x4c] ss:$16 sps:$4 sm:$0xff]   ;;  %v5587_v10 = vld [vmem:[#allocation5 + $0x40] ss:$16 sps:$4 sm:$0xff]  }
  0x6f   : > { %v5588_v11 = vld [vmem:[#allocation5 + $0x48] ss:$16 sps:$4 sm:$0xff]   ;;  %v5589_v12 = vld [vmem:[#allocation5 + $0x64] ss:$16 sps:$4 sm:$0xff]   ;;  %v5591_v13 = vld [vmem:[#allocation5 + $0x6c] ss:$16 sps:$4 sm:$0xff]  }
  0x70   : > { %v5593_v14 = vld [vmem:[#allocation5 + $0x60] ss:$16 sps:$4 sm:$0xff]   ;;  %v5594_v15 = vld [vmem:[#allocation5 + $0x68] ss:$16 sps:$4 sm:$0xff]   ;;  %v5595_v16 = vld [vmem:[#allocation5 + $0x84] ss:$16 sps:$4 sm:$0xff]  }
  0x71   : > { %2221 = vmatpush1.bf16.msra.mxu0 %v5581_v6  ;;  %2673 = vmatpush1.bf16.msra.mxu1 %v5582_v7  ;;  %v5597_v17 = vld [vmem:[#allocation5 + $0x8c] ss:$16 sps:$4 sm:$0xff]   ;;  %v5599_v18 = vld [vmem:[#allocation5 + $0x80] ss:$16 sps:$4 sm:$0xff]   ;;  %v5600_v19 = vld [vmem:[#allocation5 + $0x88] ss:$16 sps:$4 sm:$0xff]  }
  0x72   : > { %2222 = vmatprep.subr.bf16.mxu0 %v5583_v8  ;;  %2674 = vmatprep.subr.bf16.mxu1 %v5585_v9  ;;  %v5601_v20 = vld [vmem:[#allocation5 + $0xa4] ss:$16 sps:$4 sm:$0xff]   ;;  %v5603_v21 = vld [vmem:[#allocation5 + $0xac] ss:$16 sps:$4 sm:$0xff]   ;;  %v5605_v22 = vld [vmem:[#allocation5 + $0xa0] ss:$16 sps:$4 sm:$0xff]  }
  0x73   : > { %v5606_v23 = vld [vmem:[#allocation5 + $0xa8] ss:$16 sps:$4 sm:$0xff]   ;;  %v5607_v24 = vld [vmem:[#allocation5 + $0xc4] ss:$16 sps:$4 sm:$0xff]   ;;  %v5609_v25 = vld [vmem:[#allocation5 + $0xcc] ss:$16 sps:$4 sm:$0xff]  }
  0x74   : > { %v5611_v26 = vld [vmem:[#allocation5 + $0xc0] ss:$16 sps:$4 sm:$0xff]   ;;  %v5612_v27 = vld [vmem:[#allocation5 + $0xc8] ss:$16 sps:$4 sm:$0xff]   ;;  %v5613_v28 = vld [vmem:[#allocation5 + $0xe4] ss:$16 sps:$4 sm:$0xff]  }
  0x75   : > { %2223 = vmatpush1.bf16.msra.mxu0 %v5587_v10  ;;  %2675 = vmatpush1.bf16.msra.mxu1 %v5588_v11  ;;  %v5615_v29 = vld [vmem:[#allocation5 + $0xec] ss:$16 sps:$4 sm:$0xff]   ;;  %v5617_v30 = vld [vmem:[#allocation5 + $0xe0] ss:$16 sps:$4 sm:$0xff]   ;;  %v5618_v31 = vld [vmem:[#allocation5 + $0xe8] ss:$16 sps:$4 sm:$0xff]  }
  0x76   : > { %2224 = vmatprep.subr.bf16.mxu0 %v5589_v12  ;;  %2676 = vmatprep.subr.bf16.mxu1 %v5591_v13  ;;  %v5619_v32 = vld [vmem:[#allocation5 + $0x104] ss:$16 sps:$4 sm:$0xff]   ;;  %v5621_v33 = vld [vmem:[#allocation5 + $0x10c] ss:$16 sps:$4 sm:$0xff]   ;;  %v5623_v34 = vld [vmem:[#allocation5 + $0x100] ss:$16 sps:$4 sm:$0xff]  }
  0x77   : > { %v5624_v35 = vld [vmem:[#allocation5 + $0x108] ss:$16 sps:$4 sm:$0xff]   ;;  %v5625_v36 = vld [vmem:[#allocation5 + $0x124] ss:$16 sps:$4 sm:$0xff]   ;;  %v5627_v37 = vld [vmem:[#allocation5 + $0x12c] ss:$16 sps:$4 sm:$0xff]  }
  0x78   : > { %v5629_v38 = vld [vmem:[#allocation5 + $0x120] ss:$16 sps:$4 sm:$0xff]   ;;  %v5630_v39 = vld [vmem:[#allocation5 + $0x128] ss:$16 sps:$4 sm:$0xff]   ;;  %v5631_v40 = vld [vmem:[#allocation5 + $0x144] ss:$16 sps:$4 sm:$0xff]  }
  0x79   : > { %2225 = vmatpush1.bf16.msra.mxu0 %v5593_v14  ;;  %2677 = vmatpush1.bf16.msra.mxu1 %v5594_v15  ;;  %v5633_v41 = vld [vmem:[#allocation5 + $0x14c] ss:$16 sps:$4 sm:$0xff]   ;;  %v5635_v42 = vld [vmem:[#allocation5 + $0x140] ss:$16 sps:$4 sm:$0xff]   ;;  %v5636_v43 = vld [vmem:[#allocation5 + $0x148] ss:$16 sps:$4 sm:$0xff]  }
  0x7a   : > { %2226 = vmatprep.subr.bf16.mxu0 %v5595_v16  ;;  %2678 = vmatprep.subr.bf16.mxu1 %v5597_v17  ;;  %v5637_v44 = vld [vmem:[#allocation5 + $0x164] ss:$16 sps:$4 sm:$0xff]   ;;  %v5639_v45 = vld [vmem:[#allocation5 + $0x16c] ss:$16 sps:$4 sm:$0xff]   ;;  %v5641_v48 = vld [vmem:[#allocation5 + $0x160] ss:$16 sps:$4 sm:$0xff]  }
  0x7b   : > { %v276_v46 = vld [vmem:[%s6459_s6] sm:$0xff]  ;;  %v5642_v49 = vld [vmem:[#allocation5 + $0x168] ss:$16 sps:$4 sm:$0xff]   ;;  %v5645_v52 = vld [vmem:[#allocation5 + $0x18c] ss:$16 sps:$4 sm:$0xff]   ;;  %s5494_s12 = smul.u32 384, %s6455_s17 }
  0x7c   : > { %v280_v47 = vld [vmem:[%s6459_s6 + $0x20] sm:$0xff]  ;;  %v5648_v54 = vld [vmem:[#allocation5 + $0x188] ss:$16 sps:$4 sm:$0xff]   ;;  %v5651_v56 = vld [vmem:[#allocation5 + $0x1ac] ss:$16 sps:$4 sm:$0xff]   ;;  %s5495_s29 = smul.u32 6144, %s6304_s22 }
  0x7d   : > { %2227 = vmatpush1.bf16.msra.mxu0 %v5599_v18  ;;  %2679 = vmatpush1.bf16.msra.mxu1 %v5600_v19  ;;  %v4624_v50 = vcombine.high %v276_v46, %v280_v47  ;;  %v5643_v51 = vld [vmem:[#allocation5 + $0x184] ss:$16 sps:$4 sm:$0xff]   ;;  %v5647_v53 = vld [vmem:[#allocation5 + $0x180] ss:$16 sps:$4 sm:$0xff]   ;;  %v5654_v58 = vld [vmem:[#allocation5 + $0x1a8] ss:$16 sps:$4 sm:$0xff]   ;;  %v4623_v7 = vcombine.low %v276_v46, %v280_v47 }
  0x7e   : > { %2228 = vmatprep.subr.bf16.mxu0 %v5601_v20  ;;  %2680 = vmatprep.subr.bf16.mxu1 %v5603_v21  ;;  %v5649_v55 = vld [vmem:[#allocation5 + $0x1a4] ss:$16 sps:$4 sm:$0xff]   ;;  %v5653_v57 = vld [vmem:[#allocation5 + $0x1a0] ss:$16 sps:$4 sm:$0xff]   ;;  %v5657_v60 = vld [vmem:[#allocation5 + $0x1cc] ss:$16 sps:$4 sm:$0xff]   ;;  %s6883_s14 = scalar_lea.hbm %s6937_s5, %s5495_s29 }
  0x7f   : > { %2250 = vmatprep.mubr.bf16.mxu0 %v4624_v50  ;;  %2702 = vmatprep.mubr.bf16.mxu1 %v4624_v50  ;;  %v5655_v59 = vld [vmem:[#allocation5 + $0x1c4] ss:$16 sps:$4 sm:$0xff]   ;;  %v5659_v61 = vld [vmem:[#allocation5 + $0x1c0] ss:$16 sps:$4 sm:$0xff]   ;;  %v5660_v62 = vld [vmem:[#allocation5 + $0x1c8] ss:$16 sps:$4 sm:$0xff]  }
  0x80   : > { %v5661_v63 = vld [vmem:[#allocation5 + $0x1e4] ss:$16 sps:$4 sm:$0xff]   ;;  %v5663_v0 = vld [vmem:[#allocation5 + $0x1ec] ss:$16 sps:$4 sm:$0xff]   ;;  %v5665_v1 = vld [vmem:[#allocation5 + $0x1e0] ss:$16 sps:$4 sm:$0xff]  }
  0x81   : > { %2229 = vmatpush1.bf16.msra.mxu0 %v5605_v22  ;;  %2681 = vmatpush1.bf16.msra.mxu1 %v5606_v23  ;;  %v5666_v2 = vld [vmem:[#allocation5 + $0x1e8] ss:$16 sps:$4 sm:$0xff]   ;;  %v5669_v3 = vld [vmem:[#allocation5 + $0x204] ss:$16 sps:$4 sm:$0xff]   ;;  %v5672_v4 = vld [vmem:[#allocation5 + $0x20c] ss:$16 sps:$4 sm:$0xff]  }
  0x82   : > { %2230 = vmatprep.subr.bf16.mxu0 %v5607_v24  ;;  %2682 = vmatprep.subr.bf16.mxu1 %v5609_v25  ;;  %v5667_v5 = vld [vmem:[#allocation5 + $0x200] ss:$16 sps:$4 sm:$0xff]   ;;  %v5670_v6 = vld [vmem:[#allocation5 + $0x208] ss:$16 sps:$4 sm:$0xff]   ;;  %v5675_v10 = vld [vmem:[#allocation5 + $0x224] ss:$16 sps:$4 sm:$0xff]  }
  0x83   : > { %v284_v8 = vld [vmem:[%s6459_s6 + $0x40] sm:$0xff]  ;;  %v5678_v11 = vld [vmem:[#allocation5 + $0x22c] ss:$16 sps:$4 sm:$0xff]   ;;  %v5676_v14 = vld [vmem:[#allocation5 + $0x228] ss:$16 sps:$4 sm:$0xff]   ;;  %s6775_s13 = scalar_lea.vmem [#allocation8], %s5494_s12 }
  0x84   : > { %v288_v9 = vld [vmem:[%s6459_s6 + $0x60] sm:$0xff]  ;;  %v5684_v16 = vld [vmem:[#allocation5 + $0x24c] ss:$16 sps:$4 sm:$0xff]   ;;  %v5682_v21 = vld [vmem:[#allocation5 + $0x248] ss:$16 sps:$4 sm:$0xff]   ;;  %s4518_s8 = sshll.u32 %s6775_s13, 4  ;;  %s6887_s8 = int_to_ptr.vmem [resolvable:$true] %s4518_s8 }
  0x85   : > { %2231 = vmatpush1.bf16.msra.mxu0 %v5611_v26  ;;  %2683 = vmatpush1.bf16.msra.mxu1 %v5612_v27  ;;  %v4632_v12 = vcombine.high %v284_v8, %v288_v9  ;;  %v5673_v13 = vld [vmem:[#allocation5 + $0x220] ss:$16 sps:$4 sm:$0xff]   ;;  %v5681_v15 = vld [vmem:[#allocation5 + $0x244] ss:$16 sps:$4 sm:$0xff]   ;;  %v4631_v18 = vcombine.low %v284_v8, %v288_v9  ;;  %v5690_v23 = vld [vmem:[#allocation5 + $0x26c] ss:$16 sps:$4 sm:$0xff]  }
  0x86   : > { %2232 = vmatprep.subr.bf16.mxu0 %v5613_v28  ;;  %2684 = vmatprep.subr.bf16.mxu1 %v5615_v29  ;;  %v292_v17 = vld [vmem:[%s6459_s6 + $0x80] sm:$0xff]  ;;  %v5688_v26 = vld [vmem:[#allocation5 + $0x268] ss:$16 sps:$4 sm:$0xff]   ;;  %v5696_v28 = vld [vmem:[#allocation5 + $0x28c] ss:$16 sps:$4 sm:$0xff]   ;;  %s4504_s22 = scalar_lea.sflag [#allocation4], %s6455_s17 }
  0x87   : > { %v296_v19 = vld [vmem:[%s6459_s6 + $0xa0] sm:$0xff]  ;;  %v5714_v47 = vld [vmem:[#allocation5 + $0x2ec] ss:$16 sps:$4 sm:$0xff]   ;;  %v5712_v50 = vld [vmem:[#allocation5 + $0x2e8] ss:$16 sps:$4 sm:$0xff]   ;;  %s6169_s15 = scalar_lea.vmem %s6887_s8, 6144 }
  0x88   : > { %v5679_v20 = vld [vmem:[#allocation5 + $0x240] ss:$16 sps:$4 sm:$0xff]   ;;  %v5687_v22 = vld [vmem:[#allocation5 + $0x264] ss:$16 sps:$4 sm:$0xff]   ;;  %v4640_v24 = vcombine.high %v292_v17, %v296_v19  ;;  %p6170_p11 = scmp.ne.s32.totalorder %s6887_s8, %s6169_s15  ;;  %p6951_p0 = scmp.ne.s32.totalorder %s6946_s30, 0 }
  0x89   : > { %2233 = vmatpush1.bf16.msra.mxu0 %v5617_v30  ;;  %2685 = vmatpush1.bf16.msra.mxu1 %v5618_v31  ;;  %v5685_v25 = vld [vmem:[#allocation5 + $0x260] ss:$16 sps:$4 sm:$0xff]   ;;  %v5693_v27 = vld [vmem:[#allocation5 + $0x284] ss:$16 sps:$4 sm:$0xff]   ;;  %v4639_v30 = vcombine.low %v292_v17, %v296_v19  ;;  %v5750_v19 = vld [vmem:[#allocation5 + $0x3ac] ss:$16 sps:$4 sm:$0xff]  }
  0x8a   : > { %2234 = vmatprep.subr.bf16.mxu0 %v5619_v32  ;;  %2686 = vmatprep.subr.bf16.mxu1 %v5621_v33  ;;  %v300_v29 = vld [vmem:[%s6459_s6 + $0xc0] sm:$0xff]  ;;  %v5694_v33 = vld [vmem:[#allocation5 + $0x288] ss:$16 sps:$4 sm:$0xff]   ;;  %p6171_p1 = pnand %p6170_p11, %p6951_p0  ;;  %s6250_s23 = smov [#allocation8]  }
  0x8b   : > { %v304_v31 = vld [vmem:[%s6459_s6 + $0xe0] sm:$0xff]  ;;  %s6173_s7 = sshll.u32 %s6250_s23, 4  ;;  %s6174_s7 = int_to_ptr.vmem [resolvable:$false] %s6173_s7 }
  0x8c   : > { %v5691_v32 = vld [vmem:[#allocation5 + $0x280] ss:$16 sps:$4 sm:$0xff]   ;;  %v5711_v46 = vld [vmem:[#allocation5 + $0x2e4] ss:$16 sps:$4 sm:$0xff]   ;;  %p6172_p3 = pneg %p6171_p1  ;;  %p6176_p5 = scmp.lt.s32.totalorder %s6887_s8, %s6174_s7 }
  0x8d   : > { %2235 = vmatpush1.bf16.msra.mxu0 %v5623_v34  ;;  %2687 = vmatpush1.bf16.msra.mxu1 %v5624_v35  ;;  %v5699_v34 = vld [vmem:[#allocation5 + $0x2a4] ss:$16 sps:$4 sm:$0xff]   ;;  %v5702_v35 = vld [vmem:[#allocation5 + $0x2ac] ss:$16 sps:$4 sm:$0xff]   ;;  %v5733_v9 = vld [vmem:[#allocation5 + $0x360] ss:$16 sps:$4 sm:$0xff]  }
  0x8e   : > { %2236 = vmatprep.subr.bf16.mxu0 %v5625_v36  ;;  %2688 = vmatprep.subr.bf16.mxu1 %v5627_v37  ;;  %v4648_v36 = vcombine.high %v300_v29, %v304_v31  ;;  %v5697_v37 = vld [vmem:[#allocation5 + $0x2a0] ss:$16 sps:$4 sm:$0xff]  }
  0x8f   : > { %v336_v17 = vld [vmem:[%s6459_s6 + $0x1e0] sm:$0xff] }
  0x91   : > { %2237 = vmatpush1.bf16.msra.mxu0 %v5629_v38  ;;  %2689 = vmatpush1.bf16.msra.mxu1 %v5630_v39  ;;  %v5700_v38 = vld [vmem:[#allocation5 + $0x2a8] ss:$16 sps:$4 sm:$0xff]   ;;  %v5705_v39 = vld [vmem:[#allocation5 + $0x2c4] ss:$16 sps:$4 sm:$0xff]  }
  0x92   : > { %2238 = vmatprep.subr.bf16.mxu0 %v5631_v40  ;;  %2690 = vmatprep.subr.bf16.mxu1 %v5633_v41  ;;  %v5708_v40 = vld [vmem:[#allocation5 + $0x2cc] ss:$16 sps:$4 sm:$0xff]   ;;  %v5703_v41 = vld [vmem:[#allocation5 + $0x2c0] ss:$16 sps:$4 sm:$0xff]  }
  0x95   : > { %2239 = vmatpush1.bf16.msra.mxu0 %v5635_v42  ;;  %2691 = vmatpush1.bf16.msra.mxu1 %v5636_v43  ;;  %v5706_v42 = vld [vmem:[#allocation5 + $0x2c8] ss:$16 sps:$4 sm:$0xff]   ;;  %v4647_v43 = vcombine.low %v300_v29, %v304_v31  ;;  %v5762_v31 = vld [vmem:[#allocation5 + $0x3ec] ss:$16 sps:$4 sm:$0xff]  }
  0x96   : > { %2240 = vmatprep.subr.bf16.mxu0 %v5637_v44  ;;  %2692 = vmatprep.subr.bf16.mxu1 %v5639_v45  ;;  %v308_v44 = vld [vmem:[%s6459_s6 + $0x100] sm:$0xff]  ;;  %v5754_v29 = vld [vmem:[#allocation5 + $0x3c8] ss:$16 sps:$4 sm:$0xff]  }
  0x97   : > { %v312_v45 = vld [vmem:[%s6459_s6 + $0x120] sm:$0xff] }
  0x99   : > { %2241 = vmatpush1.bf16.msra.mxu0 %v5641_v48  ;;  %2693 = vmatpush1.bf16.msra.mxu1 %v5642_v49  ;;  %v4656_v48 = vcombine.high %v308_v44, %v312_v45  ;;  %v5709_v49 = vld [vmem:[#allocation5 + $0x2e0] ss:$16 sps:$4 sm:$0xff]  }
  0x9a   : > { %2242 = vmatprep.subr.bf16.mxu0 %v5643_v51  ;;  %2694 = vmatprep.subr.bf16.mxu1 %v5645_v52  ;;  %v5717_v51 = vld [vmem:[#allocation5 + $0x304] ss:$16 sps:$4 sm:$0xff]   ;;  %v5720_v52 = vld [vmem:[#allocation5 + $0x30c] ss:$16 sps:$4 sm:$0xff]  }
  0x9d   : > { %2243 = vmatpush1.bf16.msra.mxu0 %v5647_v53  ;;  %2695 = vmatpush1.bf16.msra.mxu1 %v5648_v54  ;;  %v316_v53 = vld [vmem:[%s6459_s6 + $0x140] sm:$0xff]  ;;  %v4655_v54 = vcombine.low %v308_v44, %v312_v45 }
  0x9e   : > { %2244 = vmatprep.subr.bf16.mxu0 %v5649_v55  ;;  %2696 = vmatprep.subr.bf16.mxu1 %v5651_v56  ;;  %v320_v55 = vld [vmem:[%s6459_s6 + $0x160] sm:$0xff] }
  0x9f   : > { %v5715_v56 = vld [vmem:[#allocation5 + $0x300] ss:$16 sps:$4 sm:$0xff]  }
  0xa0   : > { %v5769_v45 = vld [vmem:[#allocation5 + $0x420] ss:$16 sps:$4 sm:$0xff]  }
  0xa1   : > { %2245 = vmatpush1.bf16.msra.mxu0 %v5653_v57  ;;  %2697 = vmatpush1.bf16.msra.mxu1 %v5654_v58  ;;  %v5718_v57 = vld [vmem:[#allocation5 + $0x308] ss:$16 sps:$4 sm:$0xff]   ;;  %v5723_v58 = vld [vmem:[#allocation5 + $0x324] ss:$16 sps:$4 sm:$0xff]  }
  0xa2   : > { %2246 = vmatprep.subr.bf16.mxu0 %v5655_v59  ;;  %2698 = vmatprep.subr.bf16.mxu1 %v5657_v60  ;;  %v5726_v59 = vld [vmem:[#allocation5 + $0x32c] ss:$16 sps:$4 sm:$0xff]   ;;  %v4664_v60 = vcombine.high %v316_v53, %v320_v55 }
  0xa5   : > { %2247 = vmatpush1.bf16.msra.mxu0 %v5659_v61  ;;  %2699 = vmatpush1.bf16.msra.mxu1 %v5660_v62  ;;  %v5721_v61 = vld [vmem:[#allocation5 + $0x320] ss:$16 sps:$4 sm:$0xff]   ;;  %v5724_v62 = vld [vmem:[#allocation5 + $0x328] ss:$16 sps:$4 sm:$0xff]  }
  0xa6   : > { %2248 = vmatprep.subr.bf16.mxu0 %v5661_v63  ;;  %2700 = vmatprep.subr.bf16.mxu1 %v5663_v0  ;;  %v5729_v63 = vld [vmem:[#allocation5 + $0x344] ss:$16 sps:$4 sm:$0xff]   ;;  %v5732_v0 = vld [vmem:[#allocation5 + $0x34c] ss:$16 sps:$4 sm:$0xff]  }
  0xa9   : > { %2249 = vmatpush1.bf16.msra.mxu0 %v5665_v1  ;;  %2701 = vmatpush1.bf16.msra.mxu1 %v5666_v2  ;;  %v324_v1 = vld [vmem:[%s6459_s6 + $0x180] sm:$0xff]  ;;  %v4663_v2 = vcombine.low %v316_v53, %v320_v55  ;;  %v297_v53 = vld [vmem:[%s6459_s6 + $0xa8] sm:$0xff] }
  0xaa   : > { %2331 = vmatprep.subr.bf16.mxu0 %v5669_v3  ;;  %2783 = vmatprep.subr.bf16.mxu1 %v5672_v4  ;;  %v328_v3 = vld [vmem:[%s6459_s6 + $0x1a0] sm:$0xff]  ;;  %v5786_v55 = vld [vmem:[#allocation5 + $0x46c] ss:$16 sps:$4 sm:$0xff]  }
  0xab   : > { %v5727_v4 = vld [vmem:[#allocation5 + $0x340] ss:$16 sps:$4 sm:$0xff]   ;;  %v4672_v8 = vcombine.high %v324_v1, %v328_v3 }
  0xac   : > { %2251 = vmatmul.mubr.bf16.vlgmr.msra.gmra.mrb[0].mxu0 %v4623_v7  ;;  %2703 = vmatmul.mubr.bf16.vlgmr.msra.gmra.mrb[0].mxu1 %v4623_v7  ;;  %v5738_v7 = vld [vmem:[#allocation5 + $0x36c] ss:$16 sps:$4 sm:$0xff]  }
  0xad   : > { %2332 = vmatpush1.bf16.msra.mxu0 %v5667_v5  ;;  %2784 = vmatpush1.bf16.msra.mxu1 %v5670_v6  ;;  %v5730_v5 = vld [vmem:[#allocation5 + $0x348] ss:$16 sps:$4 sm:$0xff]   ;;  %v5735_v6 = vld [vmem:[#allocation5 + $0x364] ss:$16 sps:$4 sm:$0xff]  }
  0xae   : > { %2333 = vmatprep.subr.bf16.mxu0 %v5675_v10  ;;  %2785 = vmatprep.subr.bf16.mxu1 %v5678_v11  ;;  %v5736_v10 = vld [vmem:[#allocation5 + $0x368] ss:$16 sps:$4 sm:$0xff]   ;;  %v5741_v11 = vld [vmem:[#allocation5 + $0x384] ss:$16 sps:$4 sm:$0xff]  }
  0xaf   : > { %2260 = vmatprep.mubr.bf16.mxu0 %v4632_v12  ;;  %2712 = vmatprep.mubr.bf16.mxu1 %v4632_v12  ;;  %v5744_v12 = vld [vmem:[#allocation5 + $0x38c] ss:$16 sps:$4 sm:$0xff]  }
  0xb1   : > { %2334 = vmatpush1.bf16.msra.mxu0 %v5673_v13  ;;  %2786 = vmatpush1.bf16.msra.mxu1 %v5676_v14  ;;  %v5739_v13 = vld [vmem:[#allocation5 + $0x380] ss:$16 sps:$4 sm:$0xff]   ;;  %v5742_v14 = vld [vmem:[#allocation5 + $0x388] ss:$16 sps:$4 sm:$0xff]  }
  0xb2   : > { %2335 = vmatprep.subr.bf16.mxu0 %v5681_v15  ;;  %2787 = vmatprep.subr.bf16.mxu1 %v5684_v16  ;;  %v4671_v15 = vcombine.low %v324_v1, %v328_v3  ;;  %v332_v16 = vld [vmem:[%s6459_s6 + $0x1c0] sm:$0xff]  ;;  %v5790_v1 = vld [vmem:[#allocation5 + $0x488] ss:$16 sps:$4 sm:$0xff]   ;;  %v5798_v3 = vld [vmem:[#allocation5 + $0x4ac] ss:$16 sps:$4 sm:$0xff]  }
  0xb4   : > { %2261 = vmatmul.mubr.bf16.gmra.mrb[4].mxu0 %v4631_v18  ;;  %2713 = vmatmul.mubr.bf16.gmra.mrb[4].mxu1 %v4631_v18  ;;  %v5747_v18 = vld [vmem:[#allocation5 + $0x3a4] ss:$16 sps:$4 sm:$0xff]  }
  0xb5   : > { %2336 = vmatpush1.bf16.msra.mxu0 %v5679_v20  ;;  %2788 = vmatpush1.bf16.msra.mxu1 %v5682_v21  ;;  %v4680_v20 = vcombine.high %v332_v16, %v336_v17  ;;  %v5745_v21 = vld [vmem:[#allocation5 + $0x3a0] ss:$16 sps:$4 sm:$0xff]  }
  0xb6   : > { %2337 = vmatprep.subr.bf16.mxu0 %v5687_v22  ;;  %2789 = vmatprep.subr.bf16.mxu1 %v5690_v23  ;;  %v5748_v22 = vld [vmem:[#allocation5 + $0x3a8] ss:$16 sps:$4 sm:$0xff]   ;;  %v5753_v23 = vld [vmem:[#allocation5 + $0x3c4] ss:$16 sps:$4 sm:$0xff]  }
  0xb7   : > { %2270 = vmatprep.mubr.bf16.mxu0 %v4640_v24  ;;  %2722 = vmatprep.mubr.bf16.mxu1 %v4640_v24  ;;  %v5756_v24 = vld [vmem:[#allocation5 + $0x3cc] ss:$16 sps:$4 sm:$0xff]  }
  0xb9   : > { %2338 = vmatpush1.bf16.msra.mxu0 %v5685_v25  ;;  %2790 = vmatpush1.bf16.msra.mxu1 %v5688_v26  ;;  %v277_v25 = vld [vmem:[%s6459_s6 + $0x8] sm:$0xff]  ;;  %v4679_v26 = vcombine.low %v332_v16, %v336_v17  ;;  %v5805_v17 = vld [vmem:[#allocation5 + $0x4e0] ss:$16 sps:$4 sm:$0xff]  }
  0xba   : > { %2339 = vmatprep.subr.bf16.mxu0 %v5693_v27  ;;  %2791 = vmatprep.subr.bf16.mxu1 %v5696_v28  ;;  %v281_v27 = vld [vmem:[%s6459_s6 + $0x28] sm:$0xff]  ;;  %v5751_v28 = vld [vmem:[#allocation5 + $0x3c0] ss:$16 sps:$4 sm:$0xff]  }
  0xbc   : > { %2271 = vmatmul.mubr.bf16.gmra.mrb[8].mxu0 %v4639_v30  ;;  %2723 = vmatmul.mubr.bf16.gmra.mrb[8].mxu1 %v4639_v30  ;;  %v5759_v30 = vld [vmem:[#allocation5 + $0x3e4] ss:$16 sps:$4 sm:$0xff]  }
  0xbd   : > { %2340 = vmatpush1.bf16.msra.mxu0 %v5691_v32  ;;  %2792 = vmatpush1.bf16.msra.mxu1 %v5694_v33  ;;  %v4626_v32 = vcombine.high %v277_v25, %v281_v27  ;;  %v5757_v33 = vld [vmem:[#allocation5 + $0x3e0] ss:$16 sps:$4 sm:$0xff]  }
  0xbe   : > { %2341 = vmatprep.subr.bf16.mxu0 %v5699_v34  ;;  %2793 = vmatprep.subr.bf16.mxu1 %v5702_v35  ;;  %v5760_v34 = vld [vmem:[#allocation5 + $0x3e8] ss:$16 sps:$4 sm:$0xff]   ;;  %v5765_v35 = vld [vmem:[#allocation5 + $0x404] ss:$16 sps:$4 sm:$0xff]  }
  0xbf   : > { %2280 = vmatprep.mubr.bf16.mxu0 %v4648_v36  ;;  %2732 = vmatprep.mubr.bf16.mxu1 %v4648_v36  ;;  %v5768_v36 = vld [vmem:[#allocation5 + $0x40c] ss:$16 sps:$4 sm:$0xff]  }
  0xc1   : > { %2342 = vmatpush1.bf16.msra.mxu0 %v5697_v37  ;;  %2794 = vmatpush1.bf16.msra.mxu1 %v5700_v38  ;;  %v285_v37 = vld [vmem:[%s6459_s6 + $0x48] sm:$0xff]  ;;  %v4625_v38 = vcombine.low %v277_v25, %v281_v27 }
  0xc2   : > { %2343 = vmatprep.subr.bf16.mxu0 %v5705_v39  ;;  %2795 = vmatprep.subr.bf16.mxu1 %v5708_v40  ;;  %v289_v39 = vld [vmem:[%s6459_s6 + $0x68] sm:$0xff]  ;;  %v5763_v40 = vld [vmem:[#allocation5 + $0x400] ss:$16 sps:$4 sm:$0xff]  }
  0xc3   : > { %v4634_v44 = vcombine.high %v285_v37, %v289_v39  ;;  %v321_v25 = vld [vmem:[%s6459_s6 + $0x168] sm:$0xff] }
  0xc4   : > { %2281 = vmatmul.mubr.bf16.gmra.mrb[12].mxu0 %v4647_v43  ;;  %2733 = vmatmul.mubr.bf16.gmra.mrb[12].mxu1 %v4647_v43  ;;  %v5774_v43 = vld [vmem:[#allocation5 + $0x42c] ss:$16 sps:$4 sm:$0xff]  }
  0xc5   : > { %2344 = vmatpush1.bf16.msra.mxu0 %v5703_v41  ;;  %2796 = vmatpush1.bf16.msra.mxu1 %v5706_v42  ;;  %v5766_v41 = vld [vmem:[#allocation5 + $0x408] ss:$16 sps:$4 sm:$0xff]   ;;  %v5771_v42 = vld [vmem:[#allocation5 + $0x424] ss:$16 sps:$4 sm:$0xff]   ;;  %v5822_v27 = vld [vmem:[#allocation5 + $0x52c] ss:$16 sps:$4 sm:$0xff]  }
  0xc6   : > { %2345 = vmatprep.subr.bf16.mxu0 %v5711_v46  ;;  %2797 = vmatprep.subr.bf16.mxu1 %v5714_v47  ;;  %v5772_v46 = vld [vmem:[#allocation5 + $0x428] ss:$16 sps:$4 sm:$0xff]   ;;  %v5777_v47 = vld [vmem:[#allocation5 + $0x444] ss:$16 sps:$4 sm:$0xff]  }
  0xc7   : > { %2290 = vmatprep.mubr.bf16.mxu0 %v4656_v48  ;;  %2742 = vmatprep.mubr.bf16.mxu1 %v4656_v48  ;;  %v5780_v48 = vld [vmem:[#allocation5 + $0x44c] ss:$16 sps:$4 sm:$0xff]  }
  0xc9   : > { %2346 = vmatpush1.bf16.msra.mxu0 %v5709_v49  ;;  %2798 = vmatpush1.bf16.msra.mxu1 %v5712_v50  ;;  %v5775_v49 = vld [vmem:[#allocation5 + $0x440] ss:$16 sps:$4 sm:$0xff]   ;;  %v5778_v50 = vld [vmem:[#allocation5 + $0x448] ss:$16 sps:$4 sm:$0xff]  }
  0xca   : > { %2347 = vmatprep.subr.bf16.mxu0 %v5717_v51  ;;  %2799 = vmatprep.subr.bf16.mxu1 %v5720_v52  ;;  %v4633_v51 = vcombine.low %v285_v37, %v289_v39  ;;  %v293_v52 = vld [vmem:[%s6459_s6 + $0x88] sm:$0xff] }
  0xcb   : > { %v5826_v37 = vld [vmem:[#allocation5 + $0x548] ss:$16 sps:$4 sm:$0xff]   ;;  %v5834_v39 = vld [vmem:[#allocation5 + $0x56c] ss:$16 sps:$4 sm:$0xff]  }
  0xcc   : > { %2291 = vmatmul.mubr.bf16.gmra.mrb[16].mxu0 %v4655_v54  ;;  %2743 = vmatmul.mubr.bf16.gmra.mrb[16].mxu1 %v4655_v54  ;;  %v5783_v54 = vld [vmem:[#allocation5 + $0x464] ss:$16 sps:$4 sm:$0xff]  }
  0xcd   : > { %2348 = vmatpush1.bf16.msra.mxu0 %v5715_v56  ;;  %2800 = vmatpush1.bf16.msra.mxu1 %v5718_v57  ;;  %v4642_v56 = vcombine.high %v293_v52, %v297_v53  ;;  %v5781_v57 = vld [vmem:[#allocation5 + $0x460] ss:$16 sps:$4 sm:$0xff]  }
  0xce   : > { %2349 = vmatprep.subr.bf16.mxu0 %v5723_v58  ;;  %2801 = vmatprep.subr.bf16.mxu1 %v5726_v59  ;;  %v5784_v58 = vld [vmem:[#allocation5 + $0x468] ss:$16 sps:$4 sm:$0xff]   ;;  %v5789_v59 = vld [vmem:[#allocation5 + $0x484] ss:$16 sps:$4 sm:$0xff]  }
  0xcf   : > { %2300 = vmatprep.mubr.bf16.mxu0 %v4664_v60  ;;  %2752 = vmatprep.mubr.bf16.mxu1 %v4664_v60  ;;  %v5792_v60 = vld [vmem:[#allocation5 + $0x48c] ss:$16 sps:$4 sm:$0xff]  }
  0xd1   : > { %2350 = vmatpush1.bf16.msra.mxu0 %v5721_v61  ;;  %2802 = vmatpush1.bf16.msra.mxu1 %v5724_v62  ;;  %v301_v61 = vld [vmem:[%s6459_s6 + $0xc8] sm:$0xff]  ;;  %v4641_v62 = vcombine.low %v293_v52, %v297_v53  ;;  %v5841_v53 = vld [vmem:[#allocation5 + $0x5a0] ss:$16 sps:$4 sm:$0xff]  }
  0xd2   : > { %2351 = vmatprep.subr.bf16.mxu0 %v5729_v63  ;;  %2803 = vmatprep.subr.bf16.mxu1 %v5732_v0  ;;  %v305_v63 = vld [vmem:[%s6459_s6 + $0xe8] sm:$0xff]  ;;  %v5787_v0 = vld [vmem:[#allocation5 + $0x480] ss:$16 sps:$4 sm:$0xff]  }
  0xd4   : > { %2301 = vmatmul.mubr.bf16.gmra.mrb[20].mxu0 %v4663_v2  ;;  %2753 = vmatmul.mubr.bf16.gmra.mrb[20].mxu1 %v4663_v2  ;;  %v5795_v2 = vld [vmem:[#allocation5 + $0x4a4] ss:$16 sps:$4 sm:$0xff]  }
  0xd5   : > { %2352 = vmatpush1.bf16.msra.mxu0 %v5727_v4  ;;  %2804 = vmatpush1.bf16.msra.mxu1 %v5730_v5  ;;  %v4650_v4 = vcombine.high %v301_v61, %v305_v63  ;;  %v5793_v5 = vld [vmem:[#allocation5 + $0x4a0] ss:$16 sps:$4 sm:$0xff]  }
  0xd6   : > { %2353 = vmatprep.subr.bf16.mxu0 %v5735_v6  ;;  %2805 = vmatprep.subr.bf16.mxu1 %v5738_v7  ;;  %v5796_v6 = vld [vmem:[#allocation5 + $0x4a8] ss:$16 sps:$4 sm:$0xff]   ;;  %v5801_v7 = vld [vmem:[#allocation5 + $0x4c4] ss:$16 sps:$4 sm:$0xff]  }
  0xd7   : > { %2310 = vmatprep.mubr.bf16.mxu0 %v4672_v8  ;;  %2762 = vmatprep.mubr.bf16.mxu1 %v4672_v8  ;;  %v5804_v8 = vld [vmem:[#allocation5 + $0x4cc] ss:$16 sps:$4 sm:$0xff]  }
  0xd9   : > { %2354 = vmatpush1.bf16.msra.mxu0 %v5733_v9  ;;  %2806 = vmatpush1.bf16.msra.mxu1 %v5736_v10  ;;  %v309_v9 = vld [vmem:[%s6459_s6 + $0x108] sm:$0xff]  ;;  %v4649_v10 = vcombine.low %v301_v61, %v305_v63  ;;  %v282_v61 = vld [vmem:[%s6459_s6 + $0x30] sm:$0xff] }
  0xda   : > { %2355 = vmatprep.subr.bf16.mxu0 %v5741_v11  ;;  %2807 = vmatprep.subr.bf16.mxu1 %v5744_v12  ;;  %v313_v11 = vld [vmem:[%s6459_s6 + $0x128] sm:$0xff]  ;;  %v5799_v12 = vld [vmem:[#allocation5 + $0x4c0] ss:$16 sps:$4 sm:$0xff]  }
  0xdb   : > { %v4658_v16 = vcombine.high %v309_v9, %v313_v11  ;;  %v5858_v63 = vld [vmem:[#allocation5 + $0x5ec] ss:$16 sps:$4 sm:$0xff]  }
  0xdc   : > { %2311 = vmatmul.mubr.bf16.gmra.mrb[24].mxu0 %v4671_v15  ;;  %2763 = vmatmul.mubr.bf16.gmra.mrb[24].mxu1 %v4671_v15  ;;  %v5810_v15 = vld [vmem:[#allocation5 + $0x4ec] ss:$16 sps:$4 sm:$0xff]  }
  0xdd   : > { %2356 = vmatpush1.bf16.msra.mxu0 %v5739_v13  ;;  %2808 = vmatpush1.bf16.msra.mxu1 %v5742_v14  ;;  %v5802_v13 = vld [vmem:[#allocation5 + $0x4c8] ss:$16 sps:$4 sm:$0xff]   ;;  %v5807_v14 = vld [vmem:[#allocation5 + $0x4e4] ss:$16 sps:$4 sm:$0xff]  }
  0xde   : > { %2357 = vmatprep.subr.bf16.mxu0 %v5747_v18  ;;  %2809 = vmatprep.subr.bf16.mxu1 %v5750_v19  ;;  %v5808_v18 = vld [vmem:[#allocation5 + $0x4e8] ss:$16 sps:$4 sm:$0xff]   ;;  %v5813_v19 = vld [vmem:[#allocation5 + $0x504] ss:$16 sps:$4 sm:$0xff]  }
  0xdf   : > { %2320 = vmatprep.mubr.bf16.mxu0 %v4680_v20  ;;  %2772 = vmatprep.mubr.bf16.mxu1 %v4680_v20  ;;  %v5816_v20 = vld [vmem:[#allocation5 + $0x50c] ss:$16 sps:$4 sm:$0xff]  }
  0xe1   : > { %2358 = vmatpush1.bf16.msra.mxu0 %v5745_v21  ;;  %2810 = vmatpush1.bf16.msra.mxu1 %v5748_v22  ;;  %v5811_v21 = vld [vmem:[#allocation5 + $0x500] ss:$16 sps:$4 sm:$0xff]   ;;  %v5814_v22 = vld [vmem:[#allocation5 + $0x508] ss:$16 sps:$4 sm:$0xff]  }
  0xe2   : > { %2359 = vmatprep.subr.bf16.mxu0 %v5753_v23  ;;  %2811 = vmatprep.subr.bf16.mxu1 %v5756_v24  ;;  %v4657_v23 = vcombine.low %v309_v9, %v313_v11  ;;  %v317_v24 = vld [vmem:[%s6459_s6 + $0x148] sm:$0xff]  ;;  %v290_v9 = vld [vmem:[%s6459_s6 + $0x70] sm:$0xff] }
  0xe3   : > { %v5870_v11 = vld [vmem:[#allocation5 + $0x62c] ss:$16 sps:$4 sm:$0xff]  }
  0xe4   : > { %2321 = vmatmul.mubr.bf16.gmra.mrb[28].mxu0 %v4679_v26  ;;  %2773 = vmatmul.mubr.bf16.gmra.mrb[28].mxu1 %v4679_v26  ;;  %v5819_v26 = vld [vmem:[#allocation5 + $0x524] ss:$16 sps:$4 sm:$0xff]  }
  0xe5   : > { %2360 = vmatpush1.bf16.msra.mxu0 %v5751_v28  ;;  %2812 = vmatpush1.bf16.msra.mxu1 %v5754_v29  ;;  %v4666_v28 = vcombine.high %v317_v24, %v321_v25  ;;  %v5817_v29 = vld [vmem:[#allocation5 + $0x520] ss:$16 sps:$4 sm:$0xff]  }
  0xe6   : > { %2361 = vmatprep.subr.bf16.mxu0 %v5759_v30  ;;  %2813 = vmatprep.subr.bf16.mxu1 %v5762_v31  ;;  %v5820_v30 = vld [vmem:[#allocation5 + $0x528] ss:$16 sps:$4 sm:$0xff]   ;;  %v5825_v31 = vld [vmem:[#allocation5 + $0x544] ss:$16 sps:$4 sm:$0xff]  }
  0xe7   : > { %2363 = vmatprep.mubr.bf16.mxu0 %v4626_v32  ;;  %2815 = vmatprep.mubr.bf16.mxu1 %v4626_v32  ;;  %v5828_v32 = vld [vmem:[#allocation5 + $0x54c] ss:$16 sps:$4 sm:$0xff]  }
  0xe9   : > { %2362 = vmatpush1.bf16.msra.mxu0 %v5757_v33  ;;  %2814 = vmatpush1.bf16.msra.mxu1 %v5760_v34  ;;  %v325_v33 = vld [vmem:[%s6459_s6 + $0x188] sm:$0xff]  ;;  %v4665_v34 = vcombine.low %v317_v24, %v321_v25  ;;  %v5877_v25 = vld [vmem:[#allocation5 + $0x660] ss:$16 sps:$4 sm:$0xff]  }
  0xea   : > { %2444 = vmatprep.subr.bf16.mxu0 %v5765_v35  ;;  %2896 = vmatprep.subr.bf16.mxu1 %v5768_v36  ;;  %v329_v35 = vld [vmem:[%s6459_s6 + $0x1a8] sm:$0xff]  ;;  %v5823_v36 = vld [vmem:[#allocation5 + $0x540] ss:$16 sps:$4 sm:$0xff]  }
  0xec   : > { %2364 = vmatmul.mubr.bf16.vlgmr.msra.gmra.mrb[0].mxu0 %v4625_v38  ;;  %2816 = vmatmul.mubr.bf16.vlgmr.msra.gmra.mrb[0].mxu1 %v4625_v38  ;;  %v5831_v38 = vld [vmem:[#allocation5 + $0x564] ss:$16 sps:$4 sm:$0xff]  }
  0xed   : > { %2445 = vmatpush1.bf16.msra.mxu0 %v5763_v40  ;;  %2897 = vmatpush1.bf16.msra.mxu1 %v5766_v41  ;;  %v4674_v40 = vcombine.high %v325_v33, %v329_v35  ;;  %v5829_v41 = vld [vmem:[#allocation5 + $0x560] ss:$16 sps:$4 sm:$0xff]  }
  0xee   : > { %2446 = vmatprep.subr.bf16.mxu0 %v5771_v42  ;;  %2898 = vmatprep.subr.bf16.mxu1 %v5774_v43  ;;  %v5832_v42 = vld [vmem:[#allocation5 + $0x568] ss:$16 sps:$4 sm:$0xff]   ;;  %v5837_v43 = vld [vmem:[#allocation5 + $0x584] ss:$16 sps:$4 sm:$0xff]  }
  0xef   : > { %2373 = vmatprep.mubr.bf16.mxu0 %v4634_v44  ;;  %2825 = vmatprep.mubr.bf16.mxu1 %v4634_v44  ;;  %v5840_v44 = vld [vmem:[#allocation5 + $0x58c] ss:$16 sps:$4 sm:$0xff]  }
  0xf1   : > { %2447 = vmatpush1.bf16.msra.mxu0 %v5769_v45  ;;  %2899 = vmatpush1.bf16.msra.mxu1 %v5772_v46  ;;  %v333_v45 = vld [vmem:[%s6459_s6 + $0x1c8] sm:$0xff]  ;;  %v4673_v46 = vcombine.low %v325_v33, %v329_v35  ;;  %v306_v33 = vld [vmem:[%s6459_s6 + $0xf0] sm:$0xff] }
  0xf2   : > { %2448 = vmatprep.subr.bf16.mxu0 %v5777_v47  ;;  %2900 = vmatprep.subr.bf16.mxu1 %v5780_v48  ;;  %v337_v47 = vld [vmem:[%s6459_s6 + $0x1e8] sm:$0xff]  ;;  %v5835_v48 = vld [vmem:[#allocation5 + $0x580] ss:$16 sps:$4 sm:$0xff]  }
  0xf3   : > { %v4682_v52 = vcombine.high %v333_v45, %v337_v47  ;;  %v5894_v35 = vld [vmem:[#allocation5 + $0x6ac] ss:$16 sps:$4 sm:$0xff]  }
  0xf4   : > { %2374 = vmatmul.mubr.bf16.gmra.mrb[4].mxu0 %v4633_v51  ;;  %2826 = vmatmul.mubr.bf16.gmra.mrb[4].mxu1 %v4633_v51  ;;  %v5846_v51 = vld [vmem:[#allocation5 + $0x5ac] ss:$16 sps:$4 sm:$0xff]  }
  0xf5   : > { %2449 = vmatpush1.bf16.msra.mxu0 %v5775_v49  ;;  %2901 = vmatpush1.bf16.msra.mxu1 %v5778_v50  ;;  %v5838_v49 = vld [vmem:[#allocation5 + $0x588] ss:$16 sps:$4 sm:$0xff]   ;;  %v5843_v50 = vld [vmem:[#allocation5 + $0x5a4] ss:$16 sps:$4 sm:$0xff]  }
  0xf6   : > { %2450 = vmatprep.subr.bf16.mxu0 %v5783_v54  ;;  %2902 = vmatprep.subr.bf16.mxu1 %v5786_v55  ;;  %v5844_v54 = vld [vmem:[#allocation5 + $0x5a8] ss:$16 sps:$4 sm:$0xff]   ;;  %v5849_v55 = vld [vmem:[#allocation5 + $0x5c4] ss:$16 sps:$4 sm:$0xff]  }
  0xf7   : > { %2383 = vmatprep.mubr.bf16.mxu0 %v4642_v56  ;;  %2835 = vmatprep.mubr.bf16.mxu1 %v4642_v56  ;;  %v5852_v56 = vld [vmem:[#allocation5 + $0x5cc] ss:$16 sps:$4 sm:$0xff]  }
  0xf9   : > { %2451 = vmatpush1.bf16.msra.mxu0 %v5781_v57  ;;  %2903 = vmatpush1.bf16.msra.mxu1 %v5784_v58  ;;  %v5847_v57 = vld [vmem:[#allocation5 + $0x5c0] ss:$16 sps:$4 sm:$0xff]   ;;  %v5850_v58 = vld [vmem:[#allocation5 + $0x5c8] ss:$16 sps:$4 sm:$0xff]  }
  0xfa   : > { %2452 = vmatprep.subr.bf16.mxu0 %v5789_v59  ;;  %2904 = vmatprep.subr.bf16.mxu1 %v5792_v60  ;;  %v4681_v59 = vcombine.low %v333_v45, %v337_v47  ;;  %v278_v60 = vld [vmem:[%s6459_s6 + $0x10] sm:$0xff]  ;;  %v5898_v45 = vld [vmem:[#allocation5 + $0x6c8] ss:$16 sps:$4 sm:$0xff]   ;;  %v5906_v47 = vld [vmem:[#allocation5 + $0x6ec] ss:$16 sps:$4 sm:$0xff]  }
  0xfc   : > { %2384 = vmatmul.mubr.bf16.gmra.mrb[8].mxu0 %v4641_v62  ;;  %2836 = vmatmul.mubr.bf16.gmra.mrb[8].mxu1 %v4641_v62  ;;  %v5855_v62 = vld [vmem:[#allocation5 + $0x5e4] ss:$16 sps:$4 sm:$0xff]  }
  0xfd   : > { %2453 = vmatpush1.bf16.msra.mxu0 %v5787_v0  ;;  %2905 = vmatpush1.bf16.msra.mxu1 %v5790_v1  ;;  %v4628_v0 = vcombine.high %v278_v60, %v282_v61  ;;  %v5853_v1 = vld [vmem:[#allocation5 + $0x5e0] ss:$16 sps:$4 sm:$0xff]  }
  0xfe   : > { %2454 = vmatprep.subr.bf16.mxu0 %v5795_v2  ;;  %2906 = vmatprep.subr.bf16.mxu1 %v5798_v3  ;;  %v5856_v2 = vld [vmem:[#allocation5 + $0x5e8] ss:$16 sps:$4 sm:$0xff]   ;;  %v5861_v3 = vld [vmem:[#allocation5 + $0x604] ss:$16 sps:$4 sm:$0xff]  }
  0xff   : > { %2393 = vmatprep.mubr.bf16.mxu0 %v4650_v4  ;;  %2845 = vmatprep.mubr.bf16.mxu1 %v4650_v4  ;;  %v5864_v4 = vld [vmem:[#allocation5 + $0x60c] ss:$16 sps:$4 sm:$0xff]  }
 0x101   : > { %2455 = vmatpush1.bf16.msra.mxu0 %v5793_v5  ;;  %2907 = vmatpush1.bf16.msra.mxu1 %v5796_v6  ;;  %v5859_v5 = vld [vmem:[#allocation5 + $0x600] ss:$16 sps:$4 sm:$0xff]   ;;  %v4627_v6 = vcombine.low %v278_v60, %v282_v61  ;;  %v5916_v61 = vld [vmem:[#allocation5 + $0x728] ss:$16 sps:$4 sm:$0xff]  }
 0x102   : > { %2456 = vmatprep.subr.bf16.mxu0 %v5801_v7  ;;  %2908 = vmatprep.subr.bf16.mxu1 %v5804_v8  ;;  %v5862_v7 = vld [vmem:[#allocation5 + $0x608] ss:$16 sps:$4 sm:$0xff]   ;;  %v286_v8 = vld [vmem:[%s6459_s6 + $0x50] sm:$0xff] }
 0x103   : > { %v5913_v60 = vld [vmem:[#allocation5 + $0x720] ss:$16 sps:$4 sm:$0xff]  }
 0x104   : > { %2394 = vmatmul.mubr.bf16.gmra.mrb[12].mxu0 %v4649_v10  ;;  %2846 = vmatmul.mubr.bf16.gmra.mrb[12].mxu1 %v4649_v10  ;;  %v5867_v10 = vld [vmem:[#allocation5 + $0x624] ss:$16 sps:$4 sm:$0xff]  }
 0x105   : > { %2457 = vmatpush1.bf16.msra.mxu0 %v5799_v12  ;;  %2909 = vmatpush1.bf16.msra.mxu1 %v5802_v13  ;;  %v4636_v12 = vcombine.high %v286_v8, %v290_v9  ;;  %v5865_v13 = vld [vmem:[#allocation5 + $0x620] ss:$16 sps:$4 sm:$0xff]  }
 0x106   : > { %2458 = vmatprep.subr.bf16.mxu0 %v5807_v14  ;;  %2910 = vmatprep.subr.bf16.mxu1 %v5810_v15  ;;  %v5868_v14 = vld [vmem:[#allocation5 + $0x628] ss:$16 sps:$4 sm:$0xff]   ;;  %v5873_v15 = vld [vmem:[#allocation5 + $0x644] ss:$16 sps:$4 sm:$0xff]  }
 0x107   : > { %2403 = vmatprep.mubr.bf16.mxu0 %v4658_v16  ;;  %2855 = vmatprep.mubr.bf16.mxu1 %v4658_v16  ;;  %v5876_v16 = vld [vmem:[#allocation5 + $0x64c] ss:$16 sps:$4 sm:$0xff]  }
 0x109   : > { %2459 = vmatpush1.bf16.msra.mxu0 %v5805_v17  ;;  %2911 = vmatpush1.bf16.msra.mxu1 %v5808_v18  ;;  %v5871_v17 = vld [vmem:[#allocation5 + $0x640] ss:$16 sps:$4 sm:$0xff]   ;;  %v5874_v18 = vld [vmem:[#allocation5 + $0x648] ss:$16 sps:$4 sm:$0xff]  }
 0x10a   : > { %2460 = vmatprep.subr.bf16.mxu0 %v5813_v19  ;;  %2912 = vmatprep.subr.bf16.mxu1 %v5816_v20  ;;  %v294_v19 = vld [vmem:[%s6459_s6 + $0x90] sm:$0xff]  ;;  %v4635_v20 = vcombine.low %v286_v8, %v290_v9  ;;  %v5928_v9 = vld [vmem:[#allocation5 + $0x768] ss:$16 sps:$4 sm:$0xff]  }
 0x10b   : > { %v5925_v8 = vld [vmem:[#allocation5 + $0x760] ss:$16 sps:$4 sm:$0xff]  }
 0x10c   : > { %2404 = vmatmul.mubr.bf16.gmra.mrb[16].mxu0 %v4657_v23  ;;  %2856 = vmatmul.mubr.bf16.gmra.mrb[16].mxu1 %v4657_v23  ;;  %v5882_v23 = vld [vmem:[#allocation5 + $0x66c] ss:$16 sps:$4 sm:$0xff]  }
 0x10d   : > { %2461 = vmatpush1.bf16.msra.mxu0 %v5811_v21  ;;  %2913 = vmatpush1.bf16.msra.mxu1 %v5814_v22  ;;  %v298_v21 = vld [vmem:[%s6459_s6 + $0xb0] sm:$0xff] }
 0x10e   : > { %2462 = vmatprep.subr.bf16.mxu0 %v5819_v26  ;;  %2914 = vmatprep.subr.bf16.mxu1 %v5822_v27  ;;  %v5879_v22 = vld [vmem:[#allocation5 + $0x664] ss:$16 sps:$4 sm:$0xff]   ;;  %v4644_v24 = vcombine.high %v294_v19, %v298_v21  ;;  %v5880_v26 = vld [vmem:[#allocation5 + $0x668] ss:$16 sps:$4 sm:$0xff]  }
 0x10f   : > { %2413 = vmatprep.mubr.bf16.mxu0 %v4666_v28  ;;  %2865 = vmatprep.mubr.bf16.mxu1 %v4666_v28  ;;  %v5885_v27 = vld [vmem:[#allocation5 + $0x684] ss:$16 sps:$4 sm:$0xff]   ;;  %v5888_v28 = vld [vmem:[#allocation5 + $0x68c] ss:$16 sps:$4 sm:$0xff]  }
 0x111   : > { %2463 = vmatpush1.bf16.msra.mxu0 %v5817_v29  ;;  %2915 = vmatpush1.bf16.msra.mxu1 %v5820_v30  ;;  %v5883_v29 = vld [vmem:[#allocation5 + $0x680] ss:$16 sps:$4 sm:$0xff]   ;;  %v5886_v30 = vld [vmem:[#allocation5 + $0x688] ss:$16 sps:$4 sm:$0xff]  }
 0x112   : > { %2464 = vmatprep.subr.bf16.mxu0 %v5825_v31  ;;  %2916 = vmatprep.subr.bf16.mxu1 %v5828_v32  ;;  %v302_v31 = vld [vmem:[%s6459_s6 + $0xd0] sm:$0xff]  ;;  %v4643_v32 = vcombine.low %v294_v19, %v298_v21  ;;  %v5942_v19 = vld [vmem:[#allocation5 + $0x7ac] ss:$16 sps:$4 sm:$0xff]   ;;  %v5940_v21 = vld [vmem:[#allocation5 + $0x7a8] ss:$16 sps:$4 sm:$0xff]  }
 0x114   : > { %2414 = vmatmul.mubr.bf16.gmra.mrb[20].mxu0 %v4665_v34  ;;  %2866 = vmatmul.mubr.bf16.gmra.mrb[20].mxu1 %v4665_v34  ;;  %v5891_v34 = vld [vmem:[#allocation5 + $0x6a4] ss:$16 sps:$4 sm:$0xff]  }
 0x115   : > { %2465 = vmatpush1.bf16.msra.mxu0 %v5823_v36  ;;  %2917 = vmatpush1.bf16.msra.mxu1 %v5826_v37  ;;  %v4652_v36 = vcombine.high %v302_v31, %v306_v33  ;;  %v5889_v37 = vld [vmem:[#allocation5 + $0x6a0] ss:$16 sps:$4 sm:$0xff]  }
 0x116   : > { %2466 = vmatprep.subr.bf16.mxu0 %v5831_v38  ;;  %2918 = vmatprep.subr.bf16.mxu1 %v5834_v39  ;;  %v5892_v38 = vld [vmem:[#allocation5 + $0x6a8] ss:$16 sps:$4 sm:$0xff]   ;;  %v5897_v39 = vld [vmem:[#allocation5 + $0x6c4] ss:$16 sps:$4 sm:$0xff]  }
 0x117   : > { %2423 = vmatprep.mubr.bf16.mxu0 %v4674_v40  ;;  %2875 = vmatprep.mubr.bf16.mxu1 %v4674_v40  ;;  %v5900_v40 = vld [vmem:[#allocation5 + $0x6cc] ss:$16 sps:$4 sm:$0xff]  }
 0x119   : > { %2467 = vmatpush1.bf16.msra.mxu0 %v5829_v41  ;;  %2919 = vmatpush1.bf16.msra.mxu1 %v5832_v42  ;;  %v5895_v41 = vld [vmem:[#allocation5 + $0x6c0] ss:$16 sps:$4 sm:$0xff]  }
 0x11a   : > { %2468 = vmatprep.subr.bf16.mxu0 %v5837_v43  ;;  %2920 = vmatprep.subr.bf16.mxu1 %v5840_v44  ;;  %v310_v42 = vld [vmem:[%s6459_s6 + $0x110] sm:$0xff]  ;;  %v4651_v43 = vcombine.low %v302_v31, %v306_v33  ;;  %v5954_v31 = vld [vmem:[#allocation5 + $0x7ec] ss:$16 sps:$4 sm:$0xff]  }
 0x11b   : > { %v314_v44 = vld [vmem:[%s6459_s6 + $0x130] sm:$0xff] }
 0x11c   : > { %2424 = vmatmul.mubr.bf16.gmra.mrb[24].mxu0 %v4673_v46  ;;  %2876 = vmatmul.mubr.bf16.gmra.mrb[24].mxu1 %v4673_v46  ;;  %v5903_v46 = vld [vmem:[#allocation5 + $0x6e4] ss:$16 sps:$4 sm:$0xff]   ;;  %v5949_v33 = vld [vmem:[#allocation5 + $0x7e0] ss:$16 sps:$4 sm:$0xff]  }
 0x11d   : > { %2469 = vmatpush1.bf16.msra.mxu0 %v5835_v48  ;;  %2921 = vmatpush1.bf16.msra.mxu1 %v5838_v49  ;;  %v4660_v48 = vcombine.high %v310_v42, %v314_v44  ;;  %v5901_v49 = vld [vmem:[#allocation5 + $0x6e0] ss:$16 sps:$4 sm:$0xff]  }
 0x11e   : > { %2470 = vmatprep.subr.bf16.mxu0 %v5843_v50  ;;  %2922 = vmatprep.subr.bf16.mxu1 %v5846_v51  ;;  %v5904_v50 = vld [vmem:[#allocation5 + $0x6e8] ss:$16 sps:$4 sm:$0xff]   ;;  %v5909_v51 = vld [vmem:[#allocation5 + $0x704] ss:$16 sps:$4 sm:$0xff]  }
 0x11f   : > { %2433 = vmatprep.mubr.bf16.mxu0 %v4682_v52  ;;  %2885 = vmatprep.mubr.bf16.mxu1 %v4682_v52  ;;  %v5912_v52 = vld [vmem:[#allocation5 + $0x70c] ss:$16 sps:$4 sm:$0xff]  }
 0x121   : > { %2471 = vmatpush1.bf16.msra.mxu0 %v5841_v53  ;;  %2923 = vmatpush1.bf16.msra.mxu1 %v5844_v54  ;;  %v5907_v53 = vld [vmem:[#allocation5 + $0x700] ss:$16 sps:$4 sm:$0xff]   ;;  %v5910_v54 = vld [vmem:[#allocation5 + $0x708] ss:$16 sps:$4 sm:$0xff]  }
 0x122   : > { %2472 = vmatprep.subr.bf16.mxu0 %v5849_v55  ;;  %2924 = vmatprep.subr.bf16.mxu1 %v5852_v56  ;;  %v4659_v55 = vcombine.low %v310_v42, %v314_v44  ;;  %v5915_v56 = vld [vmem:[#allocation5 + $0x724] ss:$16 sps:$4 sm:$0xff]   ;;  %v5966_v44 = vld [vmem:[#allocation7 + $0xe0] ss:$12 sps:$4 sm:$0xff]  }
 0x123   : > { %v5959_v42 = vld [vmem:[#allocation7 + $0x8] ss:$12 sps:$4 sm:$0xff]  }
 0x124   : > { %2434 = vmatmul.mubr.bf16.gmra.mrb[28].mxu0 %v4681_v59  ;;  %2886 = vmatmul.mubr.bf16.gmra.mrb[28].mxu1 %v4681_v59  ;;  %v322_v59 = vld [vmem:[%s6459_s6 + $0x170] sm:$0xff] }
 0x125   : > { %2473 = vmatpush1.bf16.msra.mxu0 %v5847_v57  ;;  %2925 = vmatpush1.bf16.msra.mxu1 %v5850_v58  ;;  %v5918_v57 = vld [vmem:[#allocation5 + $0x72c] ss:$16 sps:$4 sm:$0xff]   ;;  %v318_v58 = vld [vmem:[%s6459_s6 + $0x150] sm:$0xff] }
 0x126   : > { %2474 = vmatprep.subr.bf16.mxu0 %v5855_v62  ;;  %2926 = vmatprep.subr.bf16.mxu1 %v5858_v63  ;;  %v4668_v62 = vcombine.high %v318_v58, %v322_v59  ;;  %v5921_v63 = vld [vmem:[#allocation5 + $0x744] ss:$16 sps:$4 sm:$0xff]  }
 0x127   : > { %2476 = vmatprep.mubr.bf16.mxu0 %v4628_v0  ;;  %2928 = vmatprep.mubr.bf16.mxu1 %v4628_v0  ;;  %v5924_v0 = vld [vmem:[#allocation5 + $0x74c] ss:$16 sps:$4 sm:$0xff]  }
 0x129   : > { %2475 = vmatpush1.bf16.msra.mxu0 %v5853_v1  ;;  %2927 = vmatpush1.bf16.msra.mxu1 %v5856_v2  ;;  %v326_v1 = vld [vmem:[%s6459_s6 + $0x190] sm:$0xff] }
 0x12a   : > { %2557 = vmatprep.subr.bf16.mxu0 %v5861_v3  ;;  %3009 = vmatprep.subr.bf16.mxu1 %v5864_v4  ;;  %v330_v2 = vld [vmem:[%s6459_s6 + $0x1b0] sm:$0xff]  ;;  %v5922_v4 = vld [vmem:[#allocation5 + $0x748] ss:$16 sps:$4 sm:$0xff]  }
 0x12b   : > { %v5919_v3 = vld [vmem:[#allocation5 + $0x740] ss:$16 sps:$4 sm:$0xff]  }
 0x12c   : > { %2477 = vmatmul.mubr.bf16.vlgmr.msra.gmra.mrb[0].mxu0 %v4627_v6  ;;  %2929 = vmatmul.mubr.bf16.vlgmr.msra.gmra.mrb[0].mxu1 %v4627_v6  ;;  %v5927_v6 = vld [vmem:[#allocation5 + $0x764] ss:$16 sps:$4 sm:$0xff]  }
 0x12d   : > { %2558 = vmatpush1.bf16.msra.mxu0 %v5859_v5  ;;  %3010 = vmatpush1.bf16.msra.mxu1 %v5862_v7  ;;  %v4667_v5 = vcombine.low %v318_v58, %v322_v59  ;;  %v5930_v7 = vld [vmem:[#allocation5 + $0x76c] ss:$16 sps:$4 sm:$0xff]   ;;  %v5968_v59 = vld [vmem:[#allocation7 + $0x48] ss:$12 sps:$4 sm:$0xff]  }
 0x12e   : > { %2559 = vmatprep.subr.bf16.mxu0 %v5867_v10  ;;  %3011 = vmatprep.subr.bf16.mxu1 %v5870_v11  ;;  %v4676_v10 = vcombine.high %v326_v1, %v330_v2  ;;  %v5933_v11 = vld [vmem:[#allocation5 + $0x784] ss:$16 sps:$4 sm:$0xff]   ;;  %v307_v58 = vld [vmem:[%s6459_s6 + $0xf8] sm:$0xff] }
 0x12f   : > { %2486 = vmatprep.mubr.bf16.mxu0 %v4636_v12  ;;  %2938 = vmatprep.mubr.bf16.mxu1 %v4636_v12  ;;  %v5936_v12 = vld [vmem:[#allocation5 + $0x78c] ss:$16 sps:$4 sm:$0xff]  }
 0x131   : > { %2560 = vmatpush1.bf16.msra.mxu0 %v5865_v13  ;;  %3012 = vmatpush1.bf16.msra.mxu1 %v5868_v14  ;;  %v334_v13 = vld [vmem:[%s6459_s6 + $0x1d0] sm:$0xff] }
 0x132   : > { %2561 = vmatprep.subr.bf16.mxu0 %v5873_v15  ;;  %3013 = vmatprep.subr.bf16.mxu1 %v5876_v16  ;;  %v338_v14 = vld [vmem:[%s6459_s6 + $0x1f0] sm:$0xff]  ;;  %v5934_v16 = vld [vmem:[#allocation5 + $0x788] ss:$16 sps:$4 sm:$0xff]  }
 0x133   : > { %v5931_v15 = vld [vmem:[#allocation5 + $0x780] ss:$16 sps:$4 sm:$0xff]  }
 0x134   : > { %2487 = vmatmul.mubr.bf16.gmra.mrb[4].mxu0 %v4635_v20  ;;  %2939 = vmatmul.mubr.bf16.gmra.mrb[4].mxu1 %v4635_v20  ;;  %v5937_v20 = vld [vmem:[#allocation5 + $0x7a0] ss:$16 sps:$4 sm:$0xff]  }
 0x135   : > { %2562 = vmatpush1.bf16.msra.mxu0 %v5871_v17  ;;  %3014 = vmatpush1.bf16.msra.mxu1 %v5874_v18  ;;  %v4675_v17 = vcombine.low %v326_v1, %v330_v2  ;;  %v5939_v18 = vld [vmem:[#allocation5 + $0x7a4] ss:$16 sps:$4 sm:$0xff]   ;;  %v5971_v1 = vld [vmem:[#allocation7 + $0x60] ss:$12 sps:$4 sm:$0xff]  }
 0x136   : > { %2563 = vmatprep.subr.bf16.mxu0 %v5879_v22  ;;  %3015 = vmatprep.subr.bf16.mxu1 %v5882_v23  ;;  %v4684_v22 = vcombine.high %v334_v13, %v338_v14  ;;  %v5945_v23 = vld [vmem:[#allocation5 + $0x7c4] ss:$16 sps:$4 sm:$0xff]  }
 0x137   : > { %2496 = vmatprep.mubr.bf16.mxu0 %v4644_v24  ;;  %2948 = vmatprep.mubr.bf16.mxu1 %v4644_v24  ;;  %v5948_v24 = vld [vmem:[#allocation5 + $0x7cc] ss:$16 sps:$4 sm:$0xff]   ;;  %v5991_v2 = vld [vmem:[#allocation7 + $0x68] ss:$12 sps:$4 sm:$0xff]  }
 0x139   : > { %2564 = vmatpush1.bf16.msra.mxu0 %v5877_v25  ;;  %3016 = vmatpush1.bf16.msra.mxu1 %v5880_v26  ;;  %v279_v25 = vld [vmem:[%s6459_s6 + $0x18] sm:$0xff] }
 0x13a   : > { %2565 = vmatprep.subr.bf16.mxu0 %v5885_v27  ;;  %3017 = vmatprep.subr.bf16.mxu1 %v5888_v28  ;;  %v283_v26 = vld [vmem:[%s6459_s6 + $0x38] sm:$0xff]  ;;  %v4683_v27 = vcombine.low %v334_v13, %v338_v14  ;;  %v5943_v28 = vld [vmem:[#allocation5 + $0x7c0] ss:$16 sps:$4 sm:$0xff]  }
 0x13b   : > { %v5979_v13 = vld [vmem:[#allocation7 + $0x90] ss:$12 sps:$4 sm:$0xff]   ;;  %v6007_v14 = vld [vmem:[#allocation7 + $0x98] ss:$12 sps:$4 sm:$0xff]  }
 0x13c   : > { %2497 = vmatmul.mubr.bf16.gmra.mrb[8].mxu0 %v4643_v32  ;;  %2949 = vmatmul.mubr.bf16.gmra.mrb[8].mxu1 %v4643_v32  ;;  %v4630_v32 = vcombine.high %v279_v25, %v283_v26 }
 0x13d   : > { %2566 = vmatpush1.bf16.msra.mxu0 %v5883_v29  ;;  %3018 = vmatpush1.bf16.msra.mxu1 %v5886_v30  ;;  %v5946_v29 = vld [vmem:[#allocation5 + $0x7c8] ss:$16 sps:$4 sm:$0xff]   ;;  %v5951_v30 = vld [vmem:[#allocation5 + $0x7e4] ss:$16 sps:$4 sm:$0xff]  }
 0x13e   : > { %2567 = vmatprep.subr.bf16.mxu0 %v5891_v34  ;;  %3019 = vmatprep.subr.bf16.mxu1 %v5894_v35  ;;  %v5952_v34 = vld [vmem:[#allocation5 + $0x7e8] ss:$16 sps:$4 sm:$0xff]  }
 0x13f   : > { %2506 = vmatprep.mubr.bf16.mxu0 %v4652_v36  ;;  %2958 = vmatprep.mubr.bf16.mxu1 %v4652_v36  ;;  %v287_v35 = vld [vmem:[%s6459_s6 + $0x58] sm:$0xff] }
 0x140   : > { %v291_v36 = vld [vmem:[%s6459_s6 + $0x78] sm:$0xff] }
 0x141   : > { %2568 = vmatpush1.bf16.msra.mxu0 %v5889_v37  ;;  %3020 = vmatpush1.bf16.msra.mxu1 %v5892_v38  ;;  %v5957_v37 = vld [vmem:[#allocation7 + $0x4] ss:$12 sps:$4 sm:$0xff]   ;;  %v5958_v38 = vld [vmem:[#allocation7 + $0xc8] ss:$12 sps:$4 sm:$0xff]  }
 0x142   : > { %2569 = vmatprep.subr.bf16.mxu0 %v5897_v39  ;;  %3021 = vmatprep.subr.bf16.mxu1 %v5900_v40  ;;  %v4629_v39 = vcombine.low %v279_v25, %v283_v26  ;;  %v4638_v40 = vcombine.high %v287_v35, %v291_v36  ;;  %v331_v25 = vld [vmem:[%s6459_s6 + $0x1b8] sm:$0xff] }
 0x143   : > { %v5992_v26 = vld [vmem:[#allocation7 + $0xd8] ss:$12 sps:$4 sm:$0xff]  }
 0x144   : > { %2507 = vmatmul.mubr.bf16.gmra.mrb[12].mxu0 %v4651_v43  ;;  %2959 = vmatmul.mubr.bf16.gmra.mrb[12].mxu1 %v4651_v43  ;;  %v5962_v43 = vld [vmem:[#allocation7 + $0x1c] ss:$12 sps:$4 sm:$0xff]  }
 0x145   : > { %2570 = vmatpush1.bf16.msra.mxu0 %v5895_v41  ;;  %3022 = vmatpush1.bf16.msra.mxu1 %v5898_v45  ;;  %v5955_v41 = vld [vmem:[#allocation7] ss:$12 sps:$4 sm:$0xff]   ;;  %v295_v45 = vld [vmem:[%s6459_s6 + $0x98] sm:$0xff] }
 0x146   : > { %2571 = vmatprep.subr.bf16.mxu0 %v5903_v46  ;;  %3023 = vmatprep.subr.bf16.mxu1 %v5906_v47  ;;  %v299_v46 = vld [vmem:[%s6459_s6 + $0xb8] sm:$0xff] }
 0x147   : > { %2516 = vmatprep.mubr.bf16.mxu0 %v4660_v48  ;;  %2968 = vmatprep.mubr.bf16.mxu1 %v4660_v48  ;;  %v5960_v47 = vld [vmem:[#allocation7 + $0x18] ss:$12 sps:$4 sm:$0xff]   ;;  %v5967_v48 = vld [vmem:[#allocation7 + $0x20] ss:$12 sps:$4 sm:$0xff]  }
 0x149   : > { %2572 = vmatpush1.bf16.msra.mxu0 %v5901_v49  ;;  %3024 = vmatpush1.bf16.msra.mxu1 %v5904_v50  ;;  %v5965_v49 = vld [vmem:[#allocation7 + $0x34] ss:$12 sps:$4 sm:$0xff]   ;;  %v5974_v50 = vld [vmem:[#allocation7 + $0xf8] ss:$12 sps:$4 sm:$0xff]  }
 0x14a   : > { %2573 = vmatprep.subr.bf16.mxu0 %v5909_v51  ;;  %3025 = vmatprep.subr.bf16.mxu1 %v5912_v52  ;;  %v4637_v51 = vcombine.low %v287_v35, %v291_v36  ;;  %v4646_v52 = vcombine.high %v295_v45, %v299_v46  ;;  %v6005_v35 = vld [vmem:[#allocation7 + $0x124] ss:$12 sps:$4 sm:$0xff]  }
 0x14c   : > { %2517 = vmatmul.mubr.bf16.gmra.mrb[16].mxu0 %v4659_v55  ;;  %2969 = vmatmul.mubr.bf16.gmra.mrb[16].mxu1 %v4659_v55  ;;  %v5970_v55 = vld [vmem:[#allocation7 + $0x4c] ss:$12 sps:$4 sm:$0xff]  }
 0x14d   : > { %2574 = vmatpush1.bf16.msra.mxu0 %v5907_v53  ;;  %3026 = vmatpush1.bf16.msra.mxu1 %v5910_v54  ;;  %v5963_v53 = vld [vmem:[#allocation7 + $0x30] ss:$12 sps:$4 sm:$0xff]   ;;  %v5975_v54 = vld [vmem:[#allocation7 + $0x38] ss:$12 sps:$4 sm:$0xff]  }
 0x14e   : > { %2575 = vmatprep.subr.bf16.mxu0 %v5915_v56  ;;  %3027 = vmatprep.subr.bf16.mxu1 %v5918_v57  ;;  %v5982_v56 = vld [vmem:[#allocation7 + $0x110] ss:$12 sps:$4 sm:$0xff]  }
 0x14f   : > { %2526 = vmatprep.mubr.bf16.mxu0 %v4668_v62  ;;  %2978 = vmatprep.mubr.bf16.mxu1 %v4668_v62  ;;  %v303_v57 = vld [vmem:[%s6459_s6 + $0xd8] sm:$0xff]  ;;  %v5990_v62 = vld [vmem:[#allocation7 + $0x128] ss:$12 sps:$4 sm:$0xff]  }
 0x151   : > { %2576 = vmatpush1.bf16.msra.mxu0 %v5913_v60  ;;  %3028 = vmatpush1.bf16.msra.mxu1 %v5916_v61  ;;  %v5983_v60 = vld [vmem:[#allocation7 + $0x50] ss:$12 sps:$4 sm:$0xff]  }
 0x152   : > { %2577 = vmatprep.subr.bf16.mxu0 %v5921_v63  ;;  %3029 = vmatprep.subr.bf16.mxu1 %v5924_v0  ;;  %v5973_v61 = vld [vmem:[#allocation7 + $0x64] ss:$12 sps:$4 sm:$0xff]   ;;  %v4645_v63 = vcombine.low %v295_v45, %v299_v46  ;;  %v4654_v0 = vcombine.high %v303_v57, %v307_v58  ;;  %v6018_v45 = vld [vmem:[#allocation7 + $0x16c] ss:$12 sps:$4 sm:$0xff]  }
 0x153   : > { %v6015_v46 = vld [vmem:[#allocation7 + $0xb0] ss:$12 sps:$4 sm:$0xff]  }
 0x154   : > { %2527 = vmatmul.mubr.bf16.gmra.mrb[20].mxu0 %v4667_v5  ;;  %2979 = vmatmul.mubr.bf16.gmra.mrb[20].mxu1 %v4667_v5  ;;  %v311_v5 = vld [vmem:[%s6459_s6 + $0x118] sm:$0xff] }
 0x155   : > { %2578 = vmatpush1.bf16.msra.mxu0 %v5919_v3  ;;  %3030 = vmatpush1.bf16.msra.mxu1 %v5922_v4  ;;  %v5978_v3 = vld [vmem:[#allocation7 + $0x7c] ss:$12 sps:$4 sm:$0xff]   ;;  %v5998_v4 = vld [vmem:[#allocation7 + $0x140] ss:$12 sps:$4 sm:$0xff]  }
 0x156   : > { %2579 = vmatprep.subr.bf16.mxu0 %v5927_v6  ;;  %3031 = vmatprep.subr.bf16.mxu1 %v5930_v7  ;;  %v315_v6 = vld [vmem:[%s6459_s6 + $0x138] sm:$0xff] }
 0x157   : > { %2536 = vmatprep.mubr.bf16.mxu0 %v4676_v10  ;;  %2988 = vmatprep.mubr.bf16.mxu1 %v4676_v10  ;;  %v5976_v7 = vld [vmem:[#allocation7 + $0x78] ss:$12 sps:$4 sm:$0xff]  }
 0x158   : > { %v6006_v10 = vld [vmem:[#allocation7 + $0x158] ss:$12 sps:$4 sm:$0xff]  }
 0x159   : > { %2580 = vmatpush1.bf16.msra.mxu0 %v5925_v8  ;;  %3032 = vmatpush1.bf16.msra.mxu1 %v5928_v9  ;;  %v5999_v8 = vld [vmem:[#allocation7 + $0x80] ss:$12 sps:$4 sm:$0xff]  }
 0x15a   : > { %2581 = vmatprep.subr.bf16.mxu0 %v5933_v11  ;;  %3033 = vmatprep.subr.bf16.mxu1 %v5936_v12  ;;  %v5981_v9 = vld [vmem:[#allocation7 + $0x94] ss:$12 sps:$4 sm:$0xff]   ;;  %v4653_v11 = vcombine.low %v303_v57, %v307_v58  ;;  %v4662_v12 = vcombine.high %v311_v5, %v315_v6 }
 0x15c   : > { %2537 = vmatmul.mubr.bf16.gmra.mrb[24].mxu0 %v4675_v17  ;;  %2989 = vmatmul.mubr.bf16.gmra.mrb[24].mxu1 %v4675_v17  ;;  %v323_v17 = vld [vmem:[%s6459_s6 + $0x178] sm:$0xff] }
 0x15d   : > { %2582 = vmatpush1.bf16.msra.mxu0 %v5931_v15  ;;  %3034 = vmatpush1.bf16.msra.mxu1 %v5934_v16  ;;  %v5986_v15 = vld [vmem:[#allocation7 + $0xac] ss:$12 sps:$4 sm:$0xff]  }
 0x15e   : > { %2583 = vmatprep.subr.bf16.mxu0 %v5939_v18  ;;  %3035 = vmatprep.subr.bf16.mxu1 %v5942_v19  ;;  %v319_v16 = vld [vmem:[%s6459_s6 + $0x158] sm:$0xff]  ;;  %v5984_v18 = vld [vmem:[#allocation7 + $0xa8] ss:$12 sps:$4 sm:$0xff]   ;;  %v5989_v19 = vld [vmem:[#allocation7 + $0xc4] ss:$12 sps:$4 sm:$0xff]  }
 0x15f   : > { %2546 = vmatprep.mubr.bf16.mxu0 %v4684_v22  ;;  %2998 = vmatprep.mubr.bf16.mxu1 %v4684_v22  ;;  %v5987_v22 = vld [vmem:[#allocation7 + $0xc0] ss:$12 sps:$4 sm:$0xff]  }
 0x161   : > { %2584 = vmatpush1.bf16.msra.mxu0 %v5937_v20  ;;  %3036 = vmatpush1.bf16.msra.mxu1 %v5940_v21  ;;  %v4661_v20 = vcombine.low %v311_v5, %v315_v6  ;;  %v4670_v21 = vcombine.high %v319_v16, %v323_v17 }
 0x162   : > { %2585 = vmatprep.subr.bf16.mxu0 %v5945_v23  ;;  %3037 = vmatprep.subr.bf16.mxu1 %v5948_v24  ;;  %v5994_v23 = vld [vmem:[#allocation7 + $0xdc] ss:$12 sps:$4 sm:$0xff]  }
 0x163   : > { %v327_v24 = vld [vmem:[%s6459_s6 + $0x198] sm:$0xff] }
 0x164   : > { %2547 = vmatmul.mubr.bf16.gmra.mrb[28].mxu0 %v4683_v27  ;;  %2999 = vmatmul.mubr.bf16.gmra.mrb[28].mxu1 %v4683_v27  ;;  %v5997_v27 = vld [vmem:[#allocation7 + $0xf4] ss:$12 sps:$4 sm:$0xff]   ;;  %v4677_v36 = vcombine.low %v327_v24, %v331_v25 }
 0x165   : > { %2586 = vmatpush1.bf16.msra.mxu0 %v5943_v28  ;;  %3038 = vmatpush1.bf16.msra.mxu1 %v5946_v29  ;;  %v4669_v28 = vcombine.low %v319_v16, %v323_v17  ;;  %v4678_v29 = vcombine.high %v327_v24, %v331_v25 }
 0x166   : > { %2587 = vmatprep.subr.bf16.mxu0 %v5951_v30  ;;  %3039 = vmatprep.subr.bf16.mxu1 %v5954_v31  ;;  %v5995_v30 = vld [vmem:[#allocation7 + $0xf0] ss:$12 sps:$4 sm:$0xff]   ;;  %v6002_v31 = vld [vmem:[#allocation7 + $0x10c] ss:$12 sps:$4 sm:$0xff]  }
 0x167   : > { %2589 = vmatprep.mubr.bf16.mxu0 %v4630_v32  ;;  %3041 = vmatprep.mubr.bf16.mxu1 %v4630_v32  ;;  %v335_v32 = vld [vmem:[%s6459_s6 + $0x1d8] sm:$0xff] }
 0x169   : > { %2588 = vmatpush1.bf16.msra.mxu0 %v5949_v33  ;;  %3040 = vmatpush1.bf16.msra.mxu1 %v5952_v34  ;;  %v339_v33 = vld [vmem:[%s6459_s6 + $0x1f8] sm:$0xff]  ;;  %v6000_v34 = vld [vmem:[#allocation7 + $0x108] ss:$12 sps:$4 sm:$0xff]   ;;  %s6175_s6 = scalar_lea.vmem %s6174_s7, 12288 }
 0x16a   : > { %3939 = vmatprep.subr.bf16.mxu0 %v5957_v37  ;;  %5046 = vmatprep.subr.bf16.mxu1 %v5958_v38  ;;  %v4686_v37 = vcombine.high %v335_v32, %v339_v33  ;;  %v6003_v38 = vld [vmem:[#allocation7 + $0x120] ss:$12 sps:$4 sm:$0xff]   ;;  %p6177_p9 = scmp.lt.s32.totalorder %s6175_s6, %s6169_s15 }
 0x16c   : > { %2590 = vmatmul.mubr.bf16.vlgmr.msra.gmra.mrb[0].mxu0 %v4629_v39  ;;  %3042 = vmatmul.mubr.bf16.vlgmr.msra.gmra.mrb[0].mxu1 %v4629_v39  ;;  %v4685_v39 = vcombine.low %v335_v32, %v339_v33  ;;  %p6178_p12 = por %p6177_p9, %p6176_p5 }
 0x16d   : > { %2599 = vmatprep.mubr.bf16.mxu0 %v4638_v40  ;;  %3051 = vmatprep.mubr.bf16.mxu1 %v4638_v40  ;;  %v6010_v40 = vld [vmem:[#allocation7 + $0x13c] ss:$12 sps:$4 sm:$0xff]  }
 0x16e   : > { %3940 = vmatpush1.bf16.msra.mxu0 %v5955_v41  ;;  %5047 = vmatpush3.bf16.msra.mxu1 %v5959_v42  ;;  %v6008_v41 = vld [vmem:[#allocation7 + $0x138] ss:$12 sps:$4 sm:$0xff]   ;;  %v6013_v42 = vld [vmem:[#allocation7 + $0x154] ss:$12 sps:$4 sm:$0xff]   ;;  %p6179_p2 = pnand %p6178_p12, %p6172_p3 }
 0x16f   : > { %3941 = vmatprep.subr.bf16.mxu0 %v5962_v43  ;;  %5048 = vmatprep.subr.bf16.mxu1 %v5966_v44  ;;  %v6011_v43 = vld [vmem:[#allocation7 + $0x150] ss:$12 sps:$4 sm:$0xff]  }
 0x170   : > { %v6014_v44 = vld [vmem:[#allocation7 + $0x170] ss:$12 sps:$4 sm:$0xff]  }
 0x172   : > { %3942 = vmatpush1.bf16.msra.mxu0 %v5960_v47  ;;  %5049 = vmatpush3.bf16.msra.mxu1 %v5967_v48  ;;  %v6016_v47 = vld [vmem:[#allocation7 + $0x168] ss:$12 sps:$4 sm:$0xff]   ;;  %v6021_v48 = vld [vmem:[#allocation7 + $0x184] ss:$12 sps:$4 sm:$0xff]  }
 0x173   : > { %3943 = vmatprep.subr.bf16.mxu0 %v5965_v49  ;;  %5050 = vmatprep.subr.bf16.mxu1 %v5974_v50  ;;  %v6022_v49 = vld [vmem:[#allocation7 + $0x248] ss:$12 sps:$4 sm:$0xff]   ;;  %v598_v50 = vlaneseq }
 0x174   : > { %2600 = vmatmul.mubr.bf16.gmra.mrb[4].mxu0 %v4637_v51  ;;  %3052 = vmatmul.mubr.bf16.gmra.mrb[4].mxu1 %v4637_v51 }
 0x175   : > { %2609 = vmatprep.mubr.bf16.mxu0 %v4646_v52  ;;  %3061 = vmatprep.mubr.bf16.mxu1 %v4646_v52  ;;  %v6533_v51 = vshrl.u32 %v598_v50, 7 }
 0x176   : > { %3944 = vmatpush1.bf16.msra.mxu0 %v5963_v53  ;;  %5051 = vmatpush3.bf16.msra.mxu1 %v5975_v54  ;;  %v596_v54 = vld [vmem:[%s6934_s2] sm:$0xf] }
 0x177   : > { %3945 = vmatprep.subr.bf16.mxu0 %v5970_v55  ;;  %5052 = vmatprep.subr.bf16.mxu1 %v5982_v56  ;;  %v600_v52 = vsub.s32 0, %v6533_v51  ;;  %v608_v53 = vsub.s32 2, %v6533_v51  ;;  %v604_v55 = vsub.s32 1, %v6533_v51  ;;  %v612_v56 = vsub.s32 3, %v6533_v51 }
 0x179   : > { %v6544_v57 = vrot.slane %v596_v54, %v600_v52  ;;  %v6548_v58 = vrot.slane %v596_v54, %v608_v53 }
 0x17a   : > { %3946 = vmatpush1.bf16.msra.mxu0 %v5968_v59  ;;  %5053 = vmatpush3.bf16.msra.mxu1 %v5983_v60  ;;  %v6552_v59 = vrot.slane %v596_v54, %v604_v55  ;;  %v6554_v60 = vrot.slane %v596_v54, %v612_v56 }
 0x17b   : > { %3947 = vmatprep.subr.bf16.mxu0 %v5973_v61  ;;  %5054 = vmatprep.subr.bf16.mxu1 %v5990_v62 }
 0x17c   : > { %2610 = vmatmul.mubr.bf16.gmra.mrb[8].mxu0 %v4645_v63  ;;  %3062 = vmatmul.mubr.bf16.gmra.mrb[8].mxu1 %v4645_v63 }
 0x17d   : > { %2619 = vmatprep.mubr.bf16.mxu0 %v4654_v0  ;;  %3071 = vmatprep.mubr.bf16.mxu1 %v4654_v0 }
 0x17e   : > { %3948 = vmatpush1.bf16.msra.mxu0 %v5971_v1  ;;  %5055 = vmatpush3.bf16.msra.mxu1 %v5991_v2 }
 0x17f   : > { %3949 = vmatprep.subr.bf16.mxu0 %v5978_v3  ;;  %5056 = vmatprep.subr.bf16.mxu1 %v5998_v4 }
 0x182   : > { %3950 = vmatpush1.bf16.msra.mxu0 %v5976_v7  ;;  %5057 = vmatpush3.bf16.msra.mxu1 %v5999_v8 }
 0x183   : > { %3951 = vmatprep.subr.bf16.mxu0 %v5981_v9  ;;  %5058 = vmatprep.subr.bf16.mxu1 %v6006_v10 }
 0x184   : > { %2620 = vmatmul.mubr.bf16.gmra.mrb[12].mxu0 %v4653_v11  ;;  %3072 = vmatmul.mubr.bf16.gmra.mrb[12].mxu1 %v4653_v11 }
 0x185   : > { %2629 = vmatprep.mubr.bf16.mxu0 %v4662_v12  ;;  %3081 = vmatprep.mubr.bf16.mxu1 %v4662_v12 }
 0x186   : > { %3952 = vmatpush1.bf16.msra.mxu0 %v5979_v13  ;;  %5059 = vmatpush3.bf16.msra.mxu1 %v6007_v14 }
 0x187   : > { %3953 = vmatprep.subr.bf16.mxu0 %v5986_v15  ;;  %5060 = vmatprep.subr.bf16.mxu1 %v6014_v44  ;;  %v6030_v44 = vld [vmem:[#allocation7 + $0x260] ss:$12 sps:$4 sm:$0xff]  }
 0x18a   : > { %3954 = vmatpush1.bf16.msra.mxu0 %v5984_v18  ;;  %5061 = vmatpush3.bf16.msra.mxu1 %v6015_v46 }
 0x18b   : > { %3955 = vmatprep.subr.bf16.mxu0 %v5989_v19  ;;  %5110 = vmatprep.subr.bf16.mxu1 %v6022_v49 }
 0x18c   : > { %2630 = vmatmul.mubr.bf16.gmra.mrb[16].mxu0 %v4661_v20  ;;  %3082 = vmatmul.mubr.bf16.gmra.mrb[16].mxu1 %v4661_v20 }
 0x18d   : > { %2639 = vmatprep.mubr.bf16.mxu0 %v4670_v21  ;;  %3091 = vmatprep.mubr.bf16.mxu1 %v4670_v21 }
 0x18e   : > { %3956 = vmatpush1.bf16.msra.mxu0 %v5987_v22 }
 0x18f   : > { %3957 = vmatprep.subr.bf16.mxu0 %v5994_v23 }
 0x192   : > { %3958 = vmatpush1.bf16.msra.mxu0 %v5992_v26 }
 0x193   : > { %3959 = vmatprep.subr.bf16.mxu0 %v5997_v27 }
 0x194   : > { %2640 = vmatmul.mubr.bf16.gmra.mrb[20].mxu0 %v4669_v28  ;;  %3092 = vmatmul.mubr.bf16.gmra.mrb[20].mxu1 %v4669_v28 }
 0x195   : > { %2649 = vmatprep.mubr.bf16.mxu0 %v4678_v29  ;;  %3101 = vmatprep.mubr.bf16.mxu1 %v4678_v29 }
 0x196   : > { %3960 = vmatpush1.bf16.msra.mxu0 %v5995_v30 }
 0x197   : > { %3961 = vmatprep.subr.bf16.mxu0 %v6002_v31 }
 0x19a   : > { %3962 = vmatpush1.bf16.msra.mxu0 %v6000_v34 }
 0x19b   : > { %3963 = vmatprep.subr.bf16.mxu0 %v6005_v35 }
 0x19c   : > { %2650 = vmatmul.mubr.bf16.gmra.mrb[24].mxu0 %v4677_v36  ;;  %3102 = vmatmul.mubr.bf16.gmra.mrb[24].mxu1 %v4677_v36 }
 0x19d   : > { %2659 = vmatprep.mubr.bf16.mxu0 %v4686_v37  ;;  %3111 = vmatprep.mubr.bf16.mxu1 %v4686_v37  ;;  %v6019_v37 = vld [vmem:[#allocation7 + $0x180] ss:$12 sps:$4 sm:$0xff]  }
 0x19e   : > { %3964 = vmatpush1.bf16.msra.mxu0 %v6003_v38  ;;  %v6026_v38 = vld [vmem:[#allocation7 + $0x19c] ss:$12 sps:$4 sm:$0xff]  }
 0x19f   : > { %3965 = vmatprep.subr.bf16.mxu0 %v6010_v40 }
 0x1a2   : > { %3966 = vmatpush1.bf16.msra.mxu0 %v6008_v41 }
 0x1a3   : > { %3967 = vmatprep.subr.bf16.mxu0 %v6013_v42 }
 0x1a4   : > { %2660 = vmatmul.mubr.bf16.gmra.mrb[28].mxu0 %v4685_v39  ;;  %3112 = vmatmul.mubr.bf16.gmra.mrb[28].mxu1 %v4685_v39 }
 0x1a6   : > { %3968 = vmatpush1.bf16.msra.mxu0 %v6011_v43  ;;  %v6023_v43 = vld [vmem:[#allocation7 + $0x188] ss:$12 sps:$4 sm:$0xff]  }
 0x1a7   : > { %3969 = vmatprep.subr.bf16.mxu0 %v6018_v45 }
 0x1aa   : > { %3970 = vmatpush1.bf16.msra.mxu0 %v6016_v47 }
 0x1ab   : > { %4052 = vmatprep.subr.bf16.mxu0 %v6021_v48 }
 0x23f   : > { %v2591_v61 = vpop.f32.mrb[0].mxu0  ;;  %v3043_v62 = vpop.f32.mrb[0].mxu1 }
 0x240   : > { %v5174_v63 = vadd.f32 %v2591_v61, %v6544_v57  ;;  %v5206_v0 = vadd.f32 %v3043_v62, %v6548_v58  ;;  %v2593_v1 = vpop.f32.mrb[1].mxu0  ;;  %v3045_v2 = vpop.f32.mrb[1].mxu1 }
 0x241   : > { %v5175_v3 = vadd.f32 %v2593_v1, %v6552_v59  ;;  %v5207_v4 = vadd.f32 %v3045_v2, %v6554_v60  ;;  %v2595_v5 = vpop.f32.mrb[2].mxu0  ;;  %v3047_v6 = vpop.f32.mrb[2].mxu1  ;;  %v6024_v2 = vld [vmem:[#allocation7 + $0x198] ss:$12 sps:$4 sm:$0xff]  }
 0x242   : > { %v3122_v7 = vmul.f32 0.2, %v5174_v63  ;;  %v3124_v8 = vmul.f32 0.2, %v5206_v0  ;;  %v5176_v9 = vadd.f32 %v2595_v5, %v6544_v57  ;;  %v5208_v10 = vadd.f32 %v3047_v6, %v6548_v58  ;;  %v2597_v11 = vpop.f32.mrb[3].mxu0  ;;  %v3049_v12 = vpop.f32.mrb[3].mxu1 }
 0x243   : > { %v3123_v13 = vmul.f32 0.2, %v5175_v3  ;;  %v3125_v14 = vmul.f32 0.2, %v5207_v4  ;;  %v5177_v15 = vadd.f32 %v2597_v11, %v6552_v59  ;;  %v5209_v16 = vadd.f32 %v3049_v12, %v6554_v60  ;;  %v6031_v6 = vld [vmem:[#allocation7 + $0x1a0] ss:$12 sps:$4 sm:$0xff]  }
 0x244   : > { %v3126_v17 = vmul.f32 0.2, %v5176_v9  ;;  %v3128_v18 = vmul.f32 0.2, %v5208_v10  ;;  %v3186_v21 = vmax.f32 %v5174_v63, %v3122_v7  ;;  %v3188_v22 = vmax.f32 %v5206_v0, %v3124_v8  ;;  %v6038_v11 = vld [vmem:[#allocation7 + $0x278] ss:$12 sps:$4 sm:$0xff]  }
 0x245   : > { %v3127_v19 = vmul.f32 0.2, %v5177_v15  ;;  %v3129_v20 = vmul.f32 0.2, %v5209_v16  ;;  %v3187_v25 = vmax.f32 %v5175_v3, %v3123_v13  ;;  %v3189_v26 = vmax.f32 %v5207_v4, %v3125_v14 }
 0x246   : > { %v3190_v23 = vmax.f32 %v5176_v9, %v3126_v17  ;;  %v3192_v24 = vmax.f32 %v5208_v10, %v3128_v18  ;;  %v6029_v10 = vld [vmem:[#allocation7 + $0x1b4] ss:$12 sps:$4 sm:$0xff]  }
 0x247   : > { %v3191_v27 = vmax.f32 %v5177_v15, %v3127_v19  ;;  %v3193_v28 = vmax.f32 %v5209_v16, %v3129_v20  ;;  %v2601_v29 = vpop.f32.mrb[4].mxu0  ;;  %v3053_v30 = vpop.f32.mrb[4].mxu1 }
 0x248   : > { %v3250_v31 = vpack.c.bf16 %v3190_v23, %v3186_v21  ;;  %v6564_v32 = vpack.c.bf16 %v3192_v24, %v3188_v22  ;;  %v5178_v33 = vadd.f32 %v2601_v29, %v6544_v57  ;;  %v5210_v34 = vadd.f32 %v3053_v30, %v6548_v58  ;;  %v2603_v35 = vpop.f32.mrb[5].mxu0  ;;  %v3055_v36 = vpop.f32.mrb[5].mxu1  ;;  %v6027_v22 = vld [vmem:[#allocation7 + $0x1b0] ss:$12 sps:$4 sm:$0xff]   ;;  %v6034_v23 = vld [vmem:[#allocation7 + $0x1cc] ss:$12 sps:$4 sm:$0xff]  }
 0x249   : > { %v5179_v39 = vadd.f32 %v2603_v35, %v6552_v59  ;;  %v2605_v40 = vpop.f32.mrb[6].mxu0  ;;  %v3057_v41 = vpop.f32.mrb[6].mxu1  ;;  %v3251_v42 = vpack.c.bf16 %v3191_v27, %v3187_v25  ;;  %v6569_v45 = vpack.c.bf16 %v3193_v28, %v3189_v26  ;;  %v6574_v61 = vadd.f32 %v3055_v36, %v6554_v60  ;;  %v6039_v30 = vld [vmem:[#allocation7 + $0x1b8] ss:$12 sps:$4 sm:$0xff]  }
 0x24a   : > { %v3130_v46 = vmul.f32 0.2, %v5178_v33  ;;  %v3132_v47 = vmul.f32 0.2, %v5210_v34  ;;  %v5180_v48 = vadd.f32 %v2605_v40, %v6544_v57  ;;  %v5212_v49 = vadd.f32 %v3057_v41, %v6548_v58  ;;  %v2607_v50 = vpop.f32.mrb[7].mxu0  ;;  %v3059_v54 = vpop.f32.mrb[7].mxu1 }
 0x24b   : > { %v3131_v56 = vmul.f32 0.2, %v5179_v39  ;;  %v5181_v62 = vadd.f32 %v2607_v50, %v6552_v59  ;;  %v6578_v63 = vadd.f32 %v3059_v54, %v6554_v60  ;;  %3971 = vmatprep.mubr.bf16.mxu0 %v3251_v42  ;;  %4197 = vmatprep.mubr.bf16.mxu1 %v3251_v42  ;;  %v3133_v13 = vmul.f32 0.2, %v6574_v61 }
 0x24c   : > { %v3134_v0 = vmul.f32 0.2, %v5180_v48  ;;  %v3136_v1 = vmul.f32 0.2, %v5212_v49  ;;  %3972 = vmatmul.mubr.bf16.vlgmr.msra.gmra.mrb[32].mxu0 %v3250_v31  ;;  %4198 = vmatmul.mubr.bf16.vlgmr.msra.gmra.mrb[32].mxu1 %v3250_v31  ;;  %v3194_v3 = vmax.f32 %v5178_v33, %v3130_v46  ;;  %v3196_v7 = vmax.f32 %v5210_v34, %v3132_v47  ;;  %v6046_v31 = vld [vmem:[#allocation7 + $0x290] ss:$12 sps:$4 sm:$0xff]  }
 0x24d   : > { %v3135_v4 = vmul.f32 0.2, %v5181_v62  ;;  %v6581_v5 = vmul.f32 0.2, %v6578_v63  ;;  %4053 = vmatpush1.bf16.msra.mxu0 %v6019_v37  ;;  %5111 = vmatpush3.bf16.msra.mxu1 %v6023_v43  ;;  %v3195_v12 = vmax.f32 %v5179_v39, %v3131_v56  ;;  %v3197_v43 = vmax.f32 %v6574_v61, %v3133_v13  ;;  %v6032_v47 = vld [vmem:[#allocation7 + $0x1c8] ss:$12 sps:$4 sm:$0xff]  }
 0x24e   : > { %v3198_v8 = vmax.f32 %v5180_v48, %v3134_v0  ;;  %v3200_v9 = vmax.f32 %v5212_v49, %v3136_v1  ;;  %4054 = vmatprep.subr.bf16.mxu0 %v6026_v38  ;;  %5112 = vmatprep.subr.bf16.mxu1 %v6030_v44  ;;  %v6047_v56 = vld [vmem:[#allocation7 + $0x1d0] ss:$12 sps:$4 sm:$0xff]   ;;  %v6054_v61 = vld [vmem:[#allocation7 + $0x2a8] ss:$12 sps:$4 sm:$0xff]  }
 0x24f   : > { %v3199_v14 = vmax.f32 %v5181_v62, %v3135_v4  ;;  %v2611_v15 = vpop.f32.mrb[8].mxu0  ;;  %v3063_v16 = vpop.f32.mrb[8].mxu1  ;;  %v3201_v25 = vmax.f32 %v6578_v63, %v6581_v5  ;;  %v6037_v0 = vld [vmem:[#allocation7 + $0x1e4] ss:$12 sps:$4 sm:$0xff]   ;;  %v6042_v13 = vld [vmem:[#allocation7 + $0x1fc] ss:$12 sps:$4 sm:$0xff]  }
 0x250   : > { %v5182_v17 = vadd.f32 %v2611_v15, %v6544_v57  ;;  %v6586_v18 = vadd.f32 %v3063_v16, %v6548_v58  ;;  %v2613_v19 = vpop.f32.mrb[9].mxu0  ;;  %v3065_v20 = vpop.f32.mrb[9].mxu1  ;;  %v3254_v21 = vpack.c.bf16 %v3198_v8, %v3194_v3  ;;  %v6588_v24 = vpack.c.bf16 %v3200_v9, %v3196_v7 }
 0x251   : > { %v5183_v26 = vadd.f32 %v2613_v19, %v6552_v59  ;;  %v2615_v27 = vpop.f32.mrb[10].mxu0  ;;  %v3067_v28 = vpop.f32.mrb[10].mxu1  ;;  %4055 = vmatpush1.bf16.msra.mxu0 %v6024_v2  ;;  %v3255_v29 = vpack.c.bf16 %v3199_v14, %v3195_v12  ;;  %5113 = vmatpush3.bf16.msra.mxu1 %v6031_v6  ;;  %v6597_v40 = vadd.f32 %v3065_v20, %v6554_v60  ;;  %v6035_v12 = vld [vmem:[#allocation7 + $0x1e0] ss:$12 sps:$4 sm:$0xff]   ;;  %v6055_v20 = vld [vmem:[#allocation7 + $0x1e8] ss:$12 sps:$4 sm:$0xff]  }
 0x252   : > { %v3138_v33 = vmul.f32 0.2, %v5182_v17  ;;  %v3140_v34 = vmul.f32 0.2, %v6586_v18  ;;  %v5184_v35 = vadd.f32 %v2615_v27, %v6544_v57  ;;  %v5216_v36 = vadd.f32 %v3067_v28, %v6548_v58  ;;  %v2617_v37 = vpop.f32.mrb[11].mxu0  ;;  %v3069_v38 = vpop.f32.mrb[11].mxu1  ;;  %4056 = vmatprep.subr.bf16.mxu0 %v6029_v10  ;;  %5114 = vmatprep.subr.bf16.mxu1 %v6038_v11 }
 0x253   : > { %v3139_v39 = vmul.f32 0.2, %v5183_v26  ;;  %v5185_v41 = vadd.f32 %v2617_v37, %v6552_v59  ;;  %v6601_v42 = vadd.f32 %v3069_v38, %v6554_v60  ;;  %3981 = vmatprep.mubr.bf16.mxu0 %v3255_v29  ;;  %4205 = vmatprep.mubr.bf16.mxu1 %v3255_v29  ;;  %v6608_v1 = vpack.c.bf16 %v3201_v25, %v3197_v43  ;;  %v6040_v37 = vld [vmem:[#allocation7 + $0x1f8] ss:$12 sps:$4 sm:$0xff]   ;;  %v6063_v43 = vld [vmem:[#allocation7 + $0x200] ss:$12 sps:$4 sm:$0xff]  }
 0x254   : > { %v3142_v44 = vmul.f32 0.2, %v5184_v35  ;;  %v3144_v46 = vmul.f32 0.2, %v5216_v36  ;;  %3982 = vmatmul.mubr.bf16.gmra.mrb[36].mxu0 %v3254_v21  ;;  %4206 = vmatmul.mubr.bf16.gmra.mrb[36].mxu1 %v3254_v21  ;;  %v3202_v48 = vmax.f32 %v5182_v17, %v3138_v33  ;;  %v3204_v49 = vmax.f32 %v6586_v18, %v3140_v34  ;;  %v6062_v21 = vld [vmem:[#allocation7 + $0x2c0] ss:$12 sps:$4 sm:$0xff]  }
 0x255   : > { %v3143_v50 = vmul.f32 0.2, %v5185_v41  ;;  %v6606_v54 = vmul.f32 0.2, %v6601_v42  ;;  %4057 = vmatpush1.bf16.msra.mxu0 %v6027_v22  ;;  %5115 = vmatpush3.bf16.msra.mxu1 %v6039_v30  ;;  %v3203_v2 = vmax.f32 %v5183_v26, %v3139_v39  ;;  %v3141_v3 = vmul.f32 0.2, %v6597_v40 }
 0x256   : > { %v3206_v62 = vmax.f32 %v5184_v35, %v3142_v44  ;;  %v3208_v63 = vmax.f32 %v5216_v36, %v3144_v46  ;;  %4058 = vmatprep.subr.bf16.mxu0 %v6034_v23  ;;  %5116 = vmatprep.subr.bf16.mxu1 %v6046_v31 }
 0x257   : > { %v3207_v4 = vmax.f32 %v5185_v41, %v3143_v50  ;;  %v2621_v5 = vpop.f32.mrb[12].mxu0  ;;  %v3073_v6 = vpop.f32.mrb[12].mxu1  ;;  %v3209_v15 = vmax.f32 %v6601_v42, %v6606_v54  ;;  %v3205_v34 = vmax.f32 %v6597_v40, %v3141_v3  ;;  %v6070_v40 = vld [vmem:[#allocation7 + $0x2d8] ss:$12 sps:$4 sm:$0xff]  }
 0x258   : > { %v5186_v7 = vadd.f32 %v2621_v5, %v6544_v57  ;;  %v6613_v8 = vadd.f32 %v3073_v6, %v6548_v58  ;;  %v2623_v9 = vpop.f32.mrb[13].mxu0  ;;  %v3075_v10 = vpop.f32.mrb[13].mxu1  ;;  %v3258_v11 = vpack.c.bf16 %v3206_v62, %v3202_v48  ;;  %v6615_v14 = vpack.c.bf16 %v3208_v63, %v3204_v49  ;;  %v6050_v5 = vld [vmem:[#allocation7 + $0x22c] ss:$12 sps:$4 sm:$0xff]  }
 0x259   : > { %v5187_v16 = vadd.f32 %v2623_v9, %v6552_v59  ;;  %v2625_v17 = vpop.f32.mrb[14].mxu0  ;;  %v3077_v18 = vpop.f32.mrb[14].mxu1  ;;  %4059 = vmatpush1.bf16.msra.mxu0 %v6032_v47  ;;  %v3259_v19 = vpack.c.bf16 %v3207_v4, %v3203_v2  ;;  %5117 = vmatpush3.bf16.msra.mxu1 %v6047_v56  ;;  %v6624_v30 = vadd.f32 %v3075_v10, %v6554_v60  ;;  %v6045_v47 = vld [vmem:[#allocation7 + $0x214] ss:$12 sps:$4 sm:$0xff]   ;;  %v6043_v4 = vld [vmem:[#allocation7 + $0x210] ss:$12 sps:$4 sm:$0xff]  }
 0x25a   : > { %v3146_v22 = vmul.f32 0.2, %v5186_v7  ;;  %v3148_v23 = vmul.f32 0.2, %v6613_v8  ;;  %v5188_v25 = vadd.f32 %v2625_v17, %v6544_v57  ;;  %v5220_v26 = vadd.f32 %v3077_v18, %v6548_v58  ;;  %v2627_v27 = vpop.f32.mrb[15].mxu0  ;;  %v3079_v28 = vpop.f32.mrb[15].mxu1  ;;  %4060 = vmatprep.subr.bf16.mxu0 %v6037_v0  ;;  %5118 = vmatprep.subr.bf16.mxu1 %v6054_v61 }
 0x25b   : > { %v3147_v29 = vmul.f32 0.2, %v5187_v16  ;;  %v5189_v31 = vadd.f32 %v2627_v27, %v6552_v59  ;;  %v6628_v33 = vadd.f32 %v3079_v28, %v6554_v60  ;;  %3991 = vmatprep.mubr.bf16.mxu0 %v3259_v19  ;;  %4213 = vmatprep.mubr.bf16.mxu1 %v3259_v19  ;;  %v6635_v48 = vpack.c.bf16 %v3209_v15, %v3205_v34 }
 0x25c   : > { %v3150_v35 = vmul.f32 0.2, %v5188_v25  ;;  %v3152_v36 = vmul.f32 0.2, %v5220_v26  ;;  %3992 = vmatmul.mubr.bf16.gmra.mrb[40].mxu0 %v3258_v11  ;;  %4214 = vmatmul.mubr.bf16.gmra.mrb[40].mxu1 %v3258_v11  ;;  %v3210_v38 = vmax.f32 %v5186_v7, %v3146_v22  ;;  %v3212_v39 = vmax.f32 %v6613_v8, %v3148_v23 }
 0x25d   : > { %v3151_v41 = vmul.f32 0.2, %v5189_v31  ;;  %v6633_v42 = vmul.f32 0.2, %v6628_v33  ;;  %4061 = vmatpush1.bf16.msra.mxu0 %v6035_v12  ;;  %5119 = vmatpush3.bf16.msra.mxu1 %v6055_v20  ;;  %v3211_v49 = vmax.f32 %v5187_v16, %v3147_v29  ;;  %v3149_v50 = vmul.f32 0.2, %v6624_v30 }
 0x25e   : > { %v3214_v44 = vmax.f32 %v5188_v25, %v3150_v35  ;;  %v3216_v46 = vmax.f32 %v5220_v26, %v3152_v36  ;;  %4062 = vmatprep.subr.bf16.mxu0 %v6042_v13  ;;  %5120 = vmatprep.subr.bf16.mxu1 %v6062_v21  ;;  %v6071_v12 = vld [vmem:[#allocation7 + $0x218] ss:$12 sps:$4 sm:$0xff]   ;;  %v6078_v13 = vld [vmem:[#allocation7 + $0x2f0] ss:$12 sps:$4 sm:$0xff]   ;;  %v6048_v29 = vld [vmem:[#allocation7 + $0x228] ss:$12 sps:$4 sm:$0xff]  }
 0x25f   : > { %v3215_v54 = vmax.f32 %v5189_v31, %v3151_v41  ;;  %v2631_v56 = vpop.f32.mrb[16].mxu0  ;;  %v3083_v62 = vpop.f32.mrb[16].mxu1  ;;  %v3217_v7 = vmax.f32 %v6628_v33, %v6633_v42  ;;  %v3213_v26 = vmax.f32 %v6624_v30, %v3149_v50  ;;  %v6079_v36 = vld [vmem:[#allocation7 + $0x230] ss:$12 sps:$4 sm:$0xff]  }
 0x260   : > { %v5190_v63 = vadd.f32 %v2631_v56, %v6544_v57  ;;  %v5222_v0 = vadd.f32 %v3083_v62, %v6548_v58  ;;  %v2633_v61 = vpop.f32.mrb[17].mxu0  ;;  %v3085_v2 = vpop.f32.mrb[17].mxu1  ;;  %v3262_v3 = vpack.c.bf16 %v3214_v44, %v3210_v38  ;;  %v6640_v6 = vpack.c.bf16 %v3216_v46, %v3212_v39  ;;  %v6053_v39 = vld [vmem:[#allocation7 + $0x244] ss:$12 sps:$4 sm:$0xff]  }
 0x261   : > { %v5191_v8 = vadd.f32 %v2633_v61, %v6552_v59  ;;  %v2635_v9 = vpop.f32.mrb[18].mxu0  ;;  %v3087_v10 = vpop.f32.mrb[18].mxu1  ;;  %4063 = vmatpush1.bf16.msra.mxu0 %v6040_v37  ;;  %v3263_v11 = vpack.c.bf16 %v3215_v54, %v3211_v49  ;;  %5121 = vmatpush3.bf16.msra.mxu1 %v6063_v43  ;;  %v6648_v22 = vadd.f32 %v3085_v2, %v6554_v60 }
 0x262   : > { %v3154_v15 = vmul.f32 0.2, %v5190_v63  ;;  %v3156_v16 = vmul.f32 0.2, %v5222_v0  ;;  %v5192_v17 = vadd.f32 %v2635_v9, %v6544_v57  ;;  %v5224_v18 = vadd.f32 %v3087_v10, %v6548_v58  ;;  %v2637_v19 = vpop.f32.mrb[19].mxu0  ;;  %v3089_v20 = vpop.f32.mrb[19].mxu1  ;;  %4064 = vmatprep.subr.bf16.mxu0 %v6045_v47  ;;  %5122 = vmatprep.subr.bf16.mxu1 %v6070_v40 }
 0x263   : > { %v3155_v21 = vmul.f32 0.2, %v5191_v8  ;;  %v5193_v23 = vadd.f32 %v2637_v19, %v6552_v59  ;;  %v6652_v25 = vadd.f32 %v3089_v20, %v6554_v60  ;;  %4001 = vmatprep.mubr.bf16.mxu0 %v3263_v11  ;;  %4221 = vmatprep.mubr.bf16.mxu1 %v3263_v11  ;;  %v6656_v41 = vpack.c.bf16 %v3217_v7, %v3213_v26  ;;  %v6056_v26 = vld [vmem:[#allocation7 + $0x258] ss:$12 sps:$4 sm:$0xff]  }
 0x264   : > { %v3158_v27 = vmul.f32 0.2, %v5192_v17  ;;  %v3160_v28 = vmul.f32 0.2, %v5224_v18  ;;  %4002 = vmatmul.mubr.bf16.gmra.mrb[44].mxu0 %v3262_v3  ;;  %4222 = vmatmul.mubr.bf16.gmra.mrb[44].mxu1 %v3262_v3  ;;  %v3218_v31 = vmax.f32 %v5190_v63, %v3154_v15  ;;  %v3220_v33 = vmax.f32 %v5222_v0, %v3156_v16 }
 0x265   : > { %v3159_v34 = vmul.f32 0.2, %v5193_v23  ;;  %v3161_v35 = vmul.f32 0.2, %v6652_v25  ;;  %4065 = vmatpush1.bf16.msra.mxu0 %v6043_v4  ;;  %5123 = vmatpush3.bf16.msra.mxu1 %v6071_v12  ;;  %v3219_v30 = vmax.f32 %v5191_v8, %v3155_v21  ;;  %v3157_v42 = vmul.f32 0.2, %v6648_v22 }
 0x266   : > { %v3222_v37 = vmax.f32 %v5192_v17, %v3158_v27  ;;  %v3224_v38 = vmax.f32 %v5224_v18, %v3160_v28  ;;  %4066 = vmatprep.subr.bf16.mxu0 %v6050_v5  ;;  %5124 = vmatprep.subr.bf16.mxu1 %v6078_v13  ;;  %v6051_v4 = vld [vmem:[#allocation7 + $0x240] ss:$12 sps:$4 sm:$0xff]   ;;  %v6058_v5 = vld [vmem:[#allocation7 + $0x25c] ss:$12 sps:$4 sm:$0xff]  }
 0x267   : > { %v3223_v43 = vmax.f32 %v5193_v23, %v3159_v34  ;;  %v3225_v44 = vmax.f32 %v6652_v25, %v3161_v35  ;;  %v2641_v46 = vpop.f32.mrb[20].mxu0  ;;  %v3093_v47 = vpop.f32.mrb[20].mxu1  ;;  %v3221_v18 = vmax.f32 %v6648_v22, %v3157_v42 }
 0x268   : > { %v5194_v40 = vadd.f32 %v2641_v46, %v6544_v57  ;;  %v5226_v49 = vadd.f32 %v3093_v47, %v6548_v58  ;;  %v2643_v50 = vpop.f32.mrb[21].mxu0  ;;  %v3095_v54 = vpop.f32.mrb[21].mxu1  ;;  %v3266_v56 = vpack.c.bf16 %v3222_v37, %v3218_v31  ;;  %v6662_v62 = vpack.c.bf16 %v3224_v38, %v3220_v33  ;;  %v6061_v31 = vld [vmem:[#allocation7 + $0x274] ss:$12 sps:$4 sm:$0xff]  }
 0x269   : > { %v5195_v63 = vadd.f32 %v2643_v50, %v6552_v59  ;;  %v5227_v0 = vadd.f32 %v3095_v54, %v6554_v60  ;;  %v2645_v61 = vpop.f32.mrb[22].mxu0  ;;  %v3097_v2 = vpop.f32.mrb[22].mxu1  ;;  %4067 = vmatpush1.bf16.msra.mxu0 %v6048_v29  ;;  %v3267_v3 = vpack.c.bf16 %v3223_v43, %v3219_v30  ;;  %5125 = vmatpush3.bf16.msra.mxu1 %v6079_v36 }
 0x26a   : > { %v3162_v7 = vmul.f32 0.2, %v5194_v40  ;;  %v3164_v8 = vmul.f32 0.2, %v5226_v49  ;;  %v5196_v9 = vadd.f32 %v2645_v61, %v6544_v57  ;;  %v5228_v10 = vadd.f32 %v3097_v2, %v6548_v58  ;;  %v2647_v11 = vpop.f32.mrb[23].mxu0  ;;  %v3099_v12 = vpop.f32.mrb[23].mxu1  ;;  %4068 = vmatprep.subr.bf16.mxu0 %v6053_v39 }
 0x26b   : > { %v3163_v13 = vmul.f32 0.2, %v5195_v63  ;;  %v3165_v15 = vmul.f32 0.2, %v5227_v0  ;;  %v5197_v16 = vadd.f32 %v2647_v11, %v6552_v59  ;;  %v5229_v17 = vadd.f32 %v3099_v12, %v6554_v60  ;;  %4011 = vmatprep.mubr.bf16.mxu0 %v3267_v3  ;;  %4229 = vmatprep.mubr.bf16.mxu1 %v3267_v3 }
 0x26c   : > { %v3166_v19 = vmul.f32 0.2, %v5196_v9  ;;  %v3168_v20 = vmul.f32 0.2, %v5228_v10  ;;  %4012 = vmatmul.mubr.bf16.gmra.mrb[48].mxu0 %v3266_v56  ;;  %4230 = vmatmul.mubr.bf16.gmra.mrb[48].mxu1 %v3266_v56  ;;  %v3226_v21 = vmax.f32 %v5194_v40, %v3162_v7  ;;  %v3228_v27 = vmax.f32 %v5226_v49, %v3164_v8  ;;  %v6059_v56 = vld [vmem:[#allocation7 + $0x270] ss:$12 sps:$4 sm:$0xff]  }
 0x26d   : > { %v3167_v23 = vmul.f32 0.2, %v5197_v16  ;;  %v3169_v25 = vmul.f32 0.2, %v5229_v17  ;;  %4069 = vmatpush1.bf16.msra.mxu0 %v6051_v4  ;;  %v6671_v33 = vpack.c.bf16 %v3225_v44, %v3221_v18  ;;  %v3227_v34 = vmax.f32 %v5195_v63, %v3163_v13  ;;  %v6066_v63 = vld [vmem:[#allocation7 + $0x28c] ss:$12 sps:$4 sm:$0xff]  }
 0x26e   : > { %v3230_v28 = vmax.f32 %v5196_v9, %v3166_v19  ;;  %v3232_v29 = vmax.f32 %v5228_v10, %v3168_v20  ;;  %4070 = vmatprep.subr.bf16.mxu0 %v6058_v5  ;;  %v3229_v35 = vmax.f32 %v5227_v0, %v3165_v15 }
 0x26f   : > { %v3231_v36 = vmax.f32 %v5197_v16, %v3167_v23  ;;  %v3233_v22 = vmax.f32 %v5229_v17, %v3169_v25  ;;  %v2651_v37 = vpop.f32.mrb[24].mxu0  ;;  %v3103_v38 = vpop.f32.mrb[24].mxu1  ;;  %v6064_v17 = vld [vmem:[#allocation7 + $0x288] ss:$12 sps:$4 sm:$0xff]   ;;  %v6069_v23 = vld [vmem:[#allocation7 + $0x2a4] ss:$12 sps:$4 sm:$0xff]  }
 0x270   : > { %v5198_v39 = vadd.f32 %v2651_v37, %v6544_v57  ;;  %v5230_v30 = vadd.f32 %v3103_v38, %v6548_v58  ;;  %v2653_v42 = vpop.f32.mrb[25].mxu0  ;;  %v3105_v43 = vpop.f32.mrb[25].mxu1  ;;  %v3270_v46 = vpack.c.bf16 %v3230_v28, %v3226_v21  ;;  %v6675_v47 = vpack.c.bf16 %v3232_v29, %v3228_v27 }
 0x271   : > { %v5199_v40 = vadd.f32 %v2653_v42, %v6552_v59  ;;  %v5231_v44 = vadd.f32 %v3105_v43, %v6554_v60  ;;  %v2655_v49 = vpop.f32.mrb[26].mxu0  ;;  %v3107_v50 = vpop.f32.mrb[26].mxu1  ;;  %4071 = vmatpush1.bf16.msra.mxu0 %v6056_v26  ;;  %v3271_v54 = vpack.c.bf16 %v3231_v36, %v3227_v34  ;;  %v6679_v0 = vpack.c.bf16 %v3233_v22, %v3229_v35 }
 0x272   : > { %v3170_v61 = vmul.f32 0.2, %v5198_v39  ;;  %v3172_v2 = vmul.f32 0.2, %v5230_v30  ;;  %v5200_v3 = vadd.f32 %v2655_v49, %v6544_v57  ;;  %v5232_v4 = vadd.f32 %v3107_v50, %v6548_v58  ;;  %v2657_v5 = vpop.f32.mrb[27].mxu0  ;;  %v3109_v7 = vpop.f32.mrb[27].mxu1  ;;  %4072 = vmatprep.subr.bf16.mxu0 %v6061_v31 }
 0x273   : > { %v3171_v8 = vmul.f32 0.2, %v5199_v40  ;;  %v3173_v9 = vmul.f32 0.2, %v5231_v44  ;;  %v5201_v10 = vadd.f32 %v2657_v5, %v6552_v59  ;;  %v5233_v11 = vadd.f32 %v3109_v7, %v6554_v60  ;;  %4021 = vmatprep.mubr.bf16.mxu0 %v3271_v54  ;;  %4237 = vmatprep.mubr.bf16.mxu1 %v3271_v54 }
 0x274   : > { %v3174_v12 = vmul.f32 0.2, %v5200_v3  ;;  %v3176_v13 = vmul.f32 0.2, %v5232_v4  ;;  %4022 = vmatmul.mubr.bf16.gmra.mrb[52].mxu0 %v3270_v46  ;;  %4238 = vmatmul.mubr.bf16.gmra.mrb[52].mxu1 %v3270_v46  ;;  %v3234_v18 = vmax.f32 %v5198_v39, %v3170_v61  ;;  %v3236_v19 = vmax.f32 %v5230_v30, %v3172_v2 }
 0x275   : > { %v3175_v15 = vmul.f32 0.2, %v5201_v10  ;;  %v3177_v16 = vmul.f32 0.2, %v5233_v11  ;;  %4073 = vmatpush1.bf16.msra.mxu0 %v6059_v56  ;;  %v3235_v25 = vmax.f32 %v5199_v40, %v3171_v8  ;;  %v3237_v26 = vmax.f32 %v5231_v44, %v3173_v9  ;;  %v6067_v40 = vld [vmem:[#allocation7 + $0x2a0] ss:$12 sps:$4 sm:$0xff]  }
 0x276   : > { %v3238_v20 = vmax.f32 %v5200_v3, %v3174_v12  ;;  %v3240_v21 = vmax.f32 %v5232_v4, %v3176_v13  ;;  %4074 = vmatprep.subr.bf16.mxu0 %v6066_v63  ;;  %v6074_v44 = vld [vmem:[#allocation7 + $0x2bc] ss:$12 sps:$4 sm:$0xff]  }
 0x277   : > { %v3239_v27 = vmax.f32 %v5201_v10, %v3175_v15  ;;  %v3241_v28 = vmax.f32 %v5233_v11, %v3177_v16  ;;  %v2661_v29 = vpop.f32.mrb[28].mxu0  ;;  %v3113_v31 = vpop.f32.mrb[28].mxu1  ;;  %v6077_v16 = vld [vmem:[#allocation7 + $0x2d4] ss:$12 sps:$4 sm:$0xff]  }
 0x278   : > { %v5202_v34 = vadd.f32 %v2661_v29, %v6544_v57  ;;  %v5234_v35 = vadd.f32 %v3113_v31, %v6548_v58  ;;  %v2663_v36 = vpop.f32.mrb[29].mxu0  ;;  %v3115_v22 = vpop.f32.mrb[29].mxu1  ;;  %v3274_v37 = vpack.c.bf16 %v3238_v20, %v3234_v18  ;;  %v6687_v38 = vpack.c.bf16 %v3240_v21, %v3236_v19 }
 0x279   : > { %v5203_v39 = vadd.f32 %v2663_v36, %v6552_v59  ;;  %v5235_v30 = vadd.f32 %v3115_v22, %v6554_v60  ;;  %v2665_v42 = vpop.f32.mrb[30].mxu0  ;;  %v3117_v43 = vpop.f32.mrb[30].mxu1  ;;  %4075 = vmatpush1.bf16.msra.mxu0 %v6064_v17  ;;  %v3275_v46 = vpack.c.bf16 %v3239_v27, %v3235_v25  ;;  %v6691_v49 = vpack.c.bf16 %v3241_v28, %v3237_v26  ;;  %v6082_v26 = vld [vmem:[#allocation7 + $0x2ec] ss:$12 sps:$4 sm:$0xff]   ;;  %v6080_v27 = vld [vmem:[#allocation7 + $0x2e8] ss:$12 sps:$4 sm:$0xff]  }
 0x27a   : > { %v3178_v50 = vmul.f32 0.2, %v5202_v34  ;;  %v3180_v54 = vmul.f32 0.2, %v5234_v35  ;;  %v5204_v56 = vadd.f32 %v2665_v42, %v6544_v57  ;;  %v5236_v63 = vadd.f32 %v3117_v43, %v6548_v58  ;;  %v2667_v61 = vpop.f32.mrb[31].mxu0  ;;  %v3119_v2 = vpop.f32.mrb[31].mxu1  ;;  %4076 = vmatprep.subr.bf16.mxu0 %v6069_v23 }
 0x27b   : > { %v3179_v3 = vmul.f32 0.2, %v5203_v39  ;;  %v3181_v4 = vmul.f32 0.2, %v5235_v30  ;;  %v5205_v5 = vadd.f32 %v2667_v61, %v6552_v59  ;;  %v5237_v7 = vadd.f32 %v3119_v2, %v6554_v60  ;;  %4031 = vmatprep.mubr.bf16.mxu0 %v3275_v46  ;;  %4245 = vmatprep.mubr.bf16.mxu1 %v3275_v46  ;;  %v6072_v57 = vld [vmem:[#allocation7 + $0x2b8] ss:$12 sps:$4 sm:$0xff]  }
 0x27c   : > { %v3182_v8 = vmul.f32 0.2, %v5204_v56  ;;  %v3184_v9 = vmul.f32 0.2, %v5236_v63  ;;  %4032 = vmatmul.mubr.bf16.gmra.mrb[56].mxu0 %v3274_v37  ;;  %4246 = vmatmul.mubr.bf16.gmra.mrb[56].mxu1 %v3274_v37  ;;  %v3242_v58 = vmax.f32 %v5202_v34, %v3178_v50  ;;  %v3244_v12 = vmax.f32 %v5234_v35, %v3180_v54  ;;  %v6075_v23 = vld [vmem:[#allocation7 + $0x2d0] ss:$12 sps:$4 sm:$0xff]  }
 0x27d   : > { %v3183_v10 = vmul.f32 0.2, %v5205_v5  ;;  %v3185_v11 = vmul.f32 0.2, %v5237_v7  ;;  %4077 = vmatpush1.bf16.msra.mxu0 %v6067_v40  ;;  %v3243_v17 = vmax.f32 %v5203_v39, %v3179_v3  ;;  %v3245_v59 = vmax.f32 %v5235_v30, %v3181_v4 }
 0x27e   : > { %v3246_v13 = vmax.f32 %v5204_v56, %v3182_v8  ;;  %v3248_v15 = vmax.f32 %v5236_v63, %v3184_v9  ;;  %4078 = vmatprep.subr.bf16.mxu0 %v6074_v44 }
 0x27f   : > { %v3247_v18 = vmax.f32 %v5205_v5, %v3183_v10  ;;  %v3249_v60 = vmax.f32 %v5237_v7, %v3185_v11 }
 0x280   : > { %v3278_v19 = vpack.c.bf16 %v3246_v13, %v3242_v58  ;;  %v3280_v20 = vpack.c.bf16 %v3248_v15, %v3244_v12  ;;  %v3410_v13 = vld [vmem:[%s6936_s4] sm:$0x7] }
 0x281   : > { %4079 = vmatpush1.bf16.msra.mxu0 %v6072_v57  ;;  %v3279_v21 = vpack.c.bf16 %v3247_v18, %v3243_v17  ;;  %v3281_v25 = vpack.c.bf16 %v3249_v60, %v3245_v59  ;;  %v6758_v17 = vrot.slane %v3410_v13, %v600_v52  ;;  %v6762_v59 = vrot.slane %v3410_v13, %v608_v53 }
 0x282   : > { %4080 = vmatprep.subr.bf16.mxu0 %v6077_v16  ;;  %v6766_v18 = vrot.slane %v3410_v13, %v604_v55 }
 0x283   : > { %4041 = vmatprep.mubr.bf16.mxu0 %v3279_v21  ;;  %4253 = vmatprep.mubr.bf16.mxu1 %v3279_v21 }
 0x284   : > { %4042 = vmatmul.mubr.bf16.gmra.mrb[60].mxu0 %v3278_v19  ;;  %4254 = vmatmul.mubr.bf16.gmra.mrb[60].mxu1 %v3278_v19 }
 0x285   : > { %4081 = vmatpush1.bf16.msra.mxu0 %v6075_v23  ;;  %4084 = vmatprep.mubr.bf16.mxu0 %v6569_v45 }
 0x286   : > { %4294 = vmatprep.mubr.bf16.mxu1 %v6569_v45  ;;  %4082 = vmatprep.subr.bf16.mxu0 %v6082_v26 }
 0x289   : > { %4083 = vmatpush1.bf16.msra.mxu0 %v6080_v27 }
 0x28c   : > { %4085 = vmatmul.mubr.bf16.vlgmr.msra.gmra.mrb[32].mxu0 %v6564_v32  ;;  %4295 = vmatmul.mubr.bf16.vlgmr.msra.gmra.mrb[64].mxu1 %v6564_v32 }
 0x28d   : > { %4094 = vmatprep.mubr.bf16.mxu0 %v6608_v1  ;;  %4302 = vmatprep.mubr.bf16.mxu1 %v6608_v1 }
 0x294   : > { %4095 = vmatmul.mubr.bf16.gmra.mrb[36].mxu0 %v6588_v24  ;;  %4303 = vmatmul.mubr.bf16.gmra.mrb[68].mxu1 %v6588_v24 }
 0x295   : > { %4104 = vmatprep.mubr.bf16.mxu0 %v6635_v48  ;;  %4310 = vmatprep.mubr.bf16.mxu1 %v6635_v48 }
 0x29c   : > { %4105 = vmatmul.mubr.bf16.gmra.mrb[40].mxu0 %v6615_v14  ;;  %4311 = vmatmul.mubr.bf16.gmra.mrb[72].mxu1 %v6615_v14 }
 0x29d   : > { %4114 = vmatprep.mubr.bf16.mxu0 %v6656_v41  ;;  %4318 = vmatprep.mubr.bf16.mxu1 %v6656_v41 }
 0x2a4   : > { %4115 = vmatmul.mubr.bf16.gmra.mrb[44].mxu0 %v6640_v6  ;;  %4319 = vmatmul.mubr.bf16.gmra.mrb[76].mxu1 %v6640_v6 }
 0x2a5   : > { %4124 = vmatprep.mubr.bf16.mxu0 %v6671_v33  ;;  %4326 = vmatprep.mubr.bf16.mxu1 %v6671_v33 }
 0x2ac   : > { %4125 = vmatmul.mubr.bf16.gmra.mrb[48].mxu0 %v6662_v62  ;;  %4327 = vmatmul.mubr.bf16.gmra.mrb[80].mxu1 %v6662_v62 }
 0x2ad   : > { %4134 = vmatprep.mubr.bf16.mxu0 %v6679_v0  ;;  %4334 = vmatprep.mubr.bf16.mxu1 %v6679_v0 }
 0x2b4   : > { %4135 = vmatmul.mubr.bf16.gmra.mrb[52].mxu0 %v6675_v47  ;;  %4335 = vmatmul.mubr.bf16.gmra.mrb[84].mxu1 %v6675_v47 }
 0x2b5   : > { %4144 = vmatprep.mubr.bf16.mxu0 %v6691_v49  ;;  %4342 = vmatprep.mubr.bf16.mxu1 %v6691_v49 }
 0x2bc   : > { %4145 = vmatmul.mubr.bf16.gmra.mrb[56].mxu0 %v6687_v38  ;;  %4343 = vmatmul.mubr.bf16.gmra.mrb[88].mxu1 %v6687_v38 }
 0x2bd   : > { %4154 = vmatprep.mubr.bf16.mxu0 %v3281_v25  ;;  %4350 = vmatprep.mubr.bf16.mxu1 %v3281_v25 }
 0x2c4   : > { %4155 = vmatmul.mubr.bf16.gmra.mrb[60].mxu0 %v3280_v20  ;;  %4351 = vmatmul.mubr.bf16.gmra.mrb[92].mxu1 %v3280_v20 }
 0x31f   : > { %v5062_v32 = vpop.f32.mrb[32].mxu1 }
 0x320   : > { %v5063_v45 = vpop.f32.mrb[33].mxu1 }
 0x321   : > { %v5064_v24 = vadd.f32 %v5063_v45, %v5062_v32  ;;  %v5065_v1 = vpop.f32.mrb[34].mxu1 }
 0x322   : > { %v5066_v14 = vpop.f32.mrb[35].mxu1 }
 0x323   : > { %v5067_v48 = vadd.f32 %v5066_v14, %v5065_v1  ;;  %v4200_v25 = vadd.f32 %v5064_v24, %v6762_v59 }
 0x325   : > { %v4203_v53 = vadd.f32 %v5067_v48, %v6762_v59 }
 0x327   : > { %v5068_v6 = vpop.f32.mrb[36].mxu1 }
 0x328   : > { %v5069_v41 = vpop.f32.mrb[37].mxu1 }
 0x329   : > { %v6725_v62 = vadd.f32 %v5069_v41, %v5068_v6  ;;  %v5071_v33 = vpop.f32.mrb[38].mxu1 }
 0x32a   : > { %v5072_v47 = vpop.f32.mrb[39].mxu1 }
 0x32b   : > { %v6727_v0 = vadd.f32 %v5072_v47, %v5071_v33 }
 0x32f   : > { %v5074_v28 = vpop.f32.mrb[40].mxu1 }
 0x330   : > { %v5075_v29 = vpop.f32.mrb[41].mxu1 }
 0x331   : > { %v6729_v31 = vadd.f32 %v5075_v29, %v5074_v28  ;;  %v5077_v34 = vpop.f32.mrb[42].mxu1 }
 0x332   : > { %v5078_v35 = vpop.f32.mrb[43].mxu1 }
 0x333   : > { %v6731_v36 = vadd.f32 %v5078_v35, %v5077_v34 }
 0x337   : > { %v5080_v22 = vpop.f32.mrb[44].mxu1 }
 0x338   : > { %v5081_v37 = vpop.f32.mrb[45].mxu1 }
 0x339   : > { %v6733_v38 = vadd.f32 %v5081_v37, %v5080_v22  ;;  %v5083_v39 = vpop.f32.mrb[46].mxu1 }
 0x33a   : > { %v5084_v30 = vpop.f32.mrb[47].mxu1 }
 0x33b   : > { %v6735_v42 = vadd.f32 %v5084_v30, %v5083_v39 }
 0x33f   : > { %v5086_v43 = vpop.f32.mrb[48].mxu1 }
 0x340   : > { %v5087_v46 = vpop.f32.mrb[49].mxu1 }
 0x341   : > { %v6737_v40 = vadd.f32 %v5087_v46, %v5086_v43  ;;  %v5089_v44 = vpop.f32.mrb[50].mxu1 }
 0x342   : > { %v5090_v49 = vpop.f32.mrb[51].mxu1 }
 0x343   : > { %v6739_v50 = vadd.f32 %v5090_v49, %v5089_v44 }
 0x347   : > { %v5092_v54 = vpop.f32.mrb[52].mxu1 }
 0x348   : > { %v5093_v56 = vpop.f32.mrb[53].mxu1 }
 0x349   : > { %v6741_v63 = vadd.f32 %v5093_v56, %v5092_v54  ;;  %v5095_v61 = vpop.f32.mrb[54].mxu1  ;;  %v4208_v54 = vadd.f32 %v6725_v62, %v6762_v59 }
 0x34a   : > { %v5096_v2 = vpop.f32.mrb[55].mxu1 }
 0x34b   : > { %v6743_v3 = vadd.f32 %v5096_v2, %v5095_v61 }
 0x34f   : > { %v5098_v4 = vpop.f32.mrb[56].mxu1 }
 0x350   : > { %v5099_v5 = vpop.f32.mrb[57].mxu1 }
 0x351   : > { %v6745_v7 = vadd.f32 %v5099_v5, %v5098_v4  ;;  %v5101_v8 = vpop.f32.mrb[58].mxu1 }
 0x352   : > { %v5102_v9 = vpop.f32.mrb[59].mxu1 }
 0x353   : > { %v6747_v10 = vadd.f32 %v5102_v9, %v5101_v8  ;;  %v4211_v8 = vadd.f32 %v6727_v0, %v6762_v59 }
 0x357   : > { %v5104_v11 = vpop.f32.mrb[60].mxu1 }
 0x358   : > { %v5105_v57 = vpop.f32.mrb[61].mxu1 }
 0x359   : > { %v6749_v58 = vadd.f32 %v5105_v57, %v5104_v11  ;;  %v5107_v12 = vpop.f32.mrb[62].mxu1 }
 0x35a   : > { %v5108_v15 = vpop.f32.mrb[63].mxu1 }
 0x35b   : > { %v6754_v16 = vadd.f32 %v5108_v15, %v5107_v12 }
 0x35f   : > { %v4086_v60 = vpop.f32.mrb[32].mxu0  ;;  %v5126_v19 = vpop.f32.mrb[64].mxu1 }
 0x360   : > { %v5238_v20 = vadd.f32 %v4086_v60, %v6758_v17  ;;  %v4088_v21 = vpop.f32.mrb[33].mxu0  ;;  %v5127_v23 = vpop.f32.mrb[65].mxu1 }
 0x361   : > { %v5239_v52 = vadd.f32 %v4088_v21, %v6766_v18  ;;  %v5128_v26 = vadd.f32 %v5127_v23, %v5126_v19  ;;  %v4090_v27 = vpop.f32.mrb[34].mxu0  ;;  %v5129_v32 = vpop.f32.mrb[66].mxu1 }
 0x362   : > { %v4359_v45 = vmul.f32 0.2, %v5238_v20  ;;  %v5240_v51 = vadd.f32 %v4090_v27, %v6758_v17  ;;  %v4092_v55 = vpop.f32.mrb[35].mxu0  ;;  %v5130_v1 = vpop.f32.mrb[67].mxu1 }
 0x363   : > { %v4360_v14 = vmul.f32 0.2, %v5239_v52  ;;  %v4297_v6 = vadd.f32 %v5128_v26, %v4200_v25  ;;  %v5241_v41 = vadd.f32 %v4092_v55, %v6766_v18  ;;  %v5131_v33 = vadd.f32 %v5130_v1, %v5129_v32 }
 0x364   : > { %v4407_v47 = vmax.f32 %v5238_v20, %v4359_v45  ;;  %v4362_v28 = vmul.f32 0.2, %v5240_v51 }
 0x365   : > { %v4408_v24 = vmax.f32 %v5239_v52, %v4360_v14  ;;  %v4361_v29 = vmul.f32 0.2, %v4297_v6  ;;  %v4363_v34 = vmul.f32 0.2, %v5241_v41  ;;  %v4300_v35 = vadd.f32 %v5131_v33, %v4203_v53 }
 0x366   : > { %4455 = vst [vmem:[%s6775_s13] sm:$0xff] %v4407_v47  ;;  %v4410_v48 = vmax.f32 %v5240_v51, %v4362_v28  ;;  %v4216_v14 = vadd.f32 %v6729_v31, %v6762_v59 }
 0x367   : > { %4456 = vst [vmem:[%s6775_s13 + $0x8] sm:$0xff] %v4408_v24  ;;  %v4409_v22 = vmax.f32 %v4297_v6, %v4361_v29  ;;  %v4411_v37 = vmax.f32 %v5241_v41, %v4363_v34  ;;  %v4364_v39 = vmul.f32 0.2, %v4300_v35  ;;  %v4096_v30 = vpop.f32.mrb[36].mxu0  ;;  %v5132_v43 = vpop.f32.mrb[68].mxu1  ;;  %v4219_v24 = vadd.f32 %v6731_v36, %v6762_v59 }
 0x368   : > { %4458 = vst [vmem:[%s6775_s13 + $0x18] sm:$0xff] %v4410_v48  ;;  %v5242_v46 = vadd.f32 %v4096_v30, %v6758_v17  ;;  %v4098_v44 = vpop.f32.mrb[37].mxu0  ;;  %v5133_v49 = vpop.f32.mrb[69].mxu1 }
 0x369   : > { %4457 = vst [vmem:[%s6775_s13 + $0x10] sm:$0xff] %v4409_v22  ;;  %4459 = vst [vmem:[%s6775_s13 + $0x20] sm:$0xff] %v4411_v37  ;;  %v4412_v56 = vmax.f32 %v4300_v35, %v4364_v39  ;;  %v5243_v61 = vadd.f32 %v4098_v44, %v6766_v18  ;;  %v5134_v2 = vadd.f32 %v5133_v49, %v5132_v43  ;;  %v4100_v4 = vpop.f32.mrb[38].mxu0  ;;  %v5135_v5 = vpop.f32.mrb[70].mxu1 }
 0x36a   : > { %v4365_v9 = vmul.f32 0.2, %v5242_v46  ;;  %v5244_v11 = vadd.f32 %v4100_v4, %v6758_v17  ;;  %v4102_v57 = vpop.f32.mrb[39].mxu0  ;;  %v5136_v12 = vpop.f32.mrb[71].mxu1 }
 0x36b   : > { %4460 = vst [vmem:[%s6775_s13 + $0x28] sm:$0xff] %v4412_v56  ;;  %v4366_v62 = vmul.f32 0.2, %v5243_v61  ;;  %v4305_v13 = vadd.f32 %v5134_v2, %v4208_v54  ;;  %v5245_v15 = vadd.f32 %v4102_v57, %v6766_v18  ;;  %v5137_v60 = vadd.f32 %v5136_v12, %v5135_v5 }
 0x36c   : > { %v4413_v19 = vmax.f32 %v5242_v46, %v4365_v9  ;;  %v4368_v20 = vmul.f32 0.2, %v5244_v11  ;;  %v4224_v57 = vadd.f32 %v6733_v38, %v6762_v59 }
 0x36d   : > { %v4414_v21 = vmax.f32 %v5243_v61, %v4366_v62  ;;  %v4367_v23 = vmul.f32 0.2, %v4305_v13  ;;  %v4369_v0 = vmul.f32 0.2, %v5245_v15  ;;  %v4308_v25 = vadd.f32 %v5137_v60, %v4211_v8 }
 0x36e   : > { %4461 = vst [vmem:[%s6775_s13 + $0x30] sm:$0xff] %v4413_v19  ;;  %v4416_v52 = vmax.f32 %v5244_v11, %v4368_v20  ;;  %v4227_v19 = vadd.f32 %v6735_v42, %v6762_v59 }
 0x36f   : > { %4462 = vst [vmem:[%s6775_s13 + $0x38] sm:$0xff] %v4414_v21  ;;  %v4415_v26 = vmax.f32 %v4305_v13, %v4367_v23  ;;  %v4417_v27 = vmax.f32 %v5245_v15, %v4369_v0  ;;  %v4370_v32 = vmul.f32 0.2, %v4308_v25  ;;  %v4106_v53 = vpop.f32.mrb[40].mxu0  ;;  %v5138_v45 = vpop.f32.mrb[72].mxu1 }
 0x370   : > { %4464 = vst [vmem:[%s6775_s13 + $0x48] sm:$0xff] %v4416_v52  ;;  %v5246_v51 = vadd.f32 %v4106_v53, %v6758_v17  ;;  %v4108_v55 = vpop.f32.mrb[41].mxu0  ;;  %v5139_v1 = vpop.f32.mrb[73].mxu1 }
 0x371   : > { %4463 = vst [vmem:[%s6775_s13 + $0x40] sm:$0xff] %v4415_v26  ;;  %4465 = vst [vmem:[%s6775_s13 + $0x50] sm:$0xff] %v4417_v27  ;;  %v4418_v6 = vmax.f32 %v4308_v25, %v4370_v32  ;;  %v5247_v41 = vadd.f32 %v4108_v55, %v6766_v18  ;;  %v5140_v33 = vadd.f32 %v5139_v1, %v5138_v45  ;;  %v4110_v47 = vpop.f32.mrb[42].mxu0  ;;  %v5141_v28 = vpop.f32.mrb[74].mxu1 }
 0x372   : > { %v4371_v29 = vmul.f32 0.2, %v5246_v51  ;;  %v5248_v34 = vadd.f32 %v4110_v47, %v6758_v17  ;;  %v4112_v35 = vpop.f32.mrb[43].mxu0  ;;  %v5142_v48 = vpop.f32.mrb[75].mxu1 }
 0x373   : > { %4466 = vst [vmem:[%s6775_s13 + $0x58] sm:$0xff] %v4418_v6  ;;  %v4372_v31 = vmul.f32 0.2, %v5247_v41  ;;  %v4313_v22 = vadd.f32 %v5140_v33, %v4216_v14  ;;  %v5249_v37 = vadd.f32 %v4112_v35, %v6766_v18  ;;  %v5143_v39 = vadd.f32 %v5142_v48, %v5141_v28 }
 0x374   : > { %v4419_v30 = vmax.f32 %v5246_v51, %v4371_v29  ;;  %v4374_v43 = vmul.f32 0.2, %v5248_v34  ;;  %v4232_v29 = vadd.f32 %v6737_v40, %v6762_v59 }
 0x375   : > { %v4420_v46 = vmax.f32 %v5247_v41, %v4372_v31  ;;  %v4373_v44 = vmul.f32 0.2, %v4313_v22  ;;  %v4375_v36 = vmul.f32 0.2, %v5249_v37  ;;  %v4316_v49 = vadd.f32 %v5143_v39, %v4219_v24 }
 0x376   : > { %4467 = vst [vmem:[%s6775_s13 + $0x60] sm:$0xff] %v4419_v30  ;;  %v4422_v54 = vmax.f32 %v5248_v34, %v4374_v43 }
 0x377   : > { %4468 = vst [vmem:[%s6775_s13 + $0x68] sm:$0xff] %v4420_v46  ;;  %v4421_v56 = vmax.f32 %v4313_v22, %v4373_v44  ;;  %v4423_v61 = vmax.f32 %v5249_v37, %v4375_v36  ;;  %v4376_v2 = vmul.f32 0.2, %v4316_v49  ;;  %v4116_v4 = vpop.f32.mrb[44].mxu0  ;;  %v5144_v5 = vpop.f32.mrb[76].mxu1  ;;  %v4235_v37 = vadd.f32 %v6739_v50, %v6762_v59 }
 0x378   : > { %4470 = vst [vmem:[%s6775_s13 + $0x78] sm:$0xff] %v4422_v54  ;;  %v5250_v8 = vadd.f32 %v4116_v4, %v6758_v17  ;;  %v4118_v9 = vpop.f32.mrb[45].mxu0  ;;  %v5145_v11 = vpop.f32.mrb[77].mxu1 }
 0x379   : > { %4469 = vst [vmem:[%s6775_s13 + $0x70] sm:$0xff] %v4421_v56  ;;  %4471 = vst [vmem:[%s6775_s13 + $0x80] sm:$0xff] %v4423_v61  ;;  %v4424_v12 = vmax.f32 %v4316_v49, %v4376_v2  ;;  %v5251_v62 = vadd.f32 %v4118_v9, %v6766_v18  ;;  %v5146_v13 = vadd.f32 %v5145_v11, %v5144_v5  ;;  %v4120_v15 = vpop.f32.mrb[46].mxu0  ;;  %v5147_v60 = vpop.f32.mrb[78].mxu1 }
 0x37a   : > { %v4377_v20 = vmul.f32 0.2, %v5250_v8  ;;  %v5252_v21 = vadd.f32 %v4120_v15, %v6758_v17  ;;  %v4122_v23 = vpop.f32.mrb[47].mxu0  ;;  %v5148_v0 = vpop.f32.mrb[79].mxu1 }
 0x37b   : > { %4472 = vst [vmem:[%s6775_s13 + $0x88] sm:$0xff] %v4424_v12  ;;  %v4378_v38 = vmul.f32 0.2, %v5251_v62  ;;  %v4321_v25 = vadd.f32 %v5146_v13, %v4224_v57  ;;  %v5253_v52 = vadd.f32 %v4122_v23, %v6766_v18  ;;  %v5149_v26 = vadd.f32 %v5148_v0, %v5147_v60 }
 0x37c   : > { %v4425_v27 = vmax.f32 %v5250_v8, %v4377_v20  ;;  %v4380_v32 = vmul.f32 0.2, %v5252_v21  ;;  %v4240_v60 = vadd.f32 %v6741_v63, %v6762_v59 }
 0x37d   : > { %v4426_v53 = vmax.f32 %v5251_v62, %v4378_v38  ;;  %v4379_v45 = vmul.f32 0.2, %v4321_v25  ;;  %v4381_v42 = vmul.f32 0.2, %v5253_v52  ;;  %v4324_v51 = vadd.f32 %v5149_v26, %v4227_v19 }
 0x37e   : > { %4473 = vst [vmem:[%s6775_s13 + $0x90] sm:$0xff] %v4425_v27  ;;  %v4428_v55 = vmax.f32 %v5252_v21, %v4380_v32  ;;  %v4243_v38 = vadd.f32 %v6743_v3, %v6762_v59 }
 0x37f   : > { %4474 = vst [vmem:[%s6775_s13 + $0x98] sm:$0xff] %v4426_v53  ;;  %v4427_v1 = vmax.f32 %v4321_v25, %v4379_v45  ;;  %v4429_v14 = vmax.f32 %v5253_v52, %v4381_v42  ;;  %v4382_v6 = vmul.f32 0.2, %v4324_v51  ;;  %v4126_v41 = vpop.f32.mrb[48].mxu0  ;;  %v5150_v33 = vpop.f32.mrb[80].mxu1 }
 0x380   : > { %4476 = vst [vmem:[%s6775_s13 + $0xa8] sm:$0xff] %v4428_v55  ;;  %v5254_v47 = vadd.f32 %v4126_v41, %v6758_v17  ;;  %v4128_v28 = vpop.f32.mrb[49].mxu0  ;;  %v5151_v24 = vpop.f32.mrb[81].mxu1 }
 0x381   : > { %4475 = vst [vmem:[%s6775_s13 + $0xa0] sm:$0xff] %v4427_v1  ;;  %4477 = vst [vmem:[%s6775_s13 + $0xb0] sm:$0xff] %v4429_v14  ;;  %v4430_v34 = vmax.f32 %v4324_v51, %v4382_v6  ;;  %v5255_v35 = vadd.f32 %v4128_v28, %v6766_v18  ;;  %v5152_v48 = vadd.f32 %v5151_v24, %v5150_v33  ;;  %v4130_v31 = vpop.f32.mrb[50].mxu0  ;;  %v5153_v22 = vpop.f32.mrb[82].mxu1 }
 0x382   : > { %v4383_v39 = vmul.f32 0.2, %v5254_v47  ;;  %v5256_v30 = vadd.f32 %v4130_v31, %v6758_v17  ;;  %v4132_v43 = vpop.f32.mrb[51].mxu0  ;;  %v5154_v46 = vpop.f32.mrb[83].mxu1 }
 0x383   : > { %4478 = vst [vmem:[%s6775_s13 + $0xb8] sm:$0xff] %v4430_v34  ;;  %v4384_v40 = vmul.f32 0.2, %v5255_v35  ;;  %v4329_v44 = vadd.f32 %v5152_v48, %v4232_v29  ;;  %v5257_v36 = vadd.f32 %v4132_v43, %v6766_v18  ;;  %v5155_v49 = vadd.f32 %v5154_v46, %v5153_v22 }
 0x384   : > { %v4431_v54 = vmax.f32 %v5254_v47, %v4383_v39  ;;  %v4386_v56 = vmul.f32 0.2, %v5256_v30  ;;  %v4248_v48 = vadd.f32 %v6745_v7, %v6762_v59  ;;  %v4251_v43 = vadd.f32 %v6747_v10, %v6762_v59 }
 0x385   : > { %v4432_v61 = vmax.f32 %v5255_v35, %v4384_v40  ;;  %v4385_v2 = vmul.f32 0.2, %v4329_v44  ;;  %v4387_v50 = vmul.f32 0.2, %v5257_v36  ;;  %v4332_v4 = vadd.f32 %v5155_v49, %v4235_v37 }
 0x386   : > { %4479 = vst [vmem:[%s6775_s13 + $0xc0] sm:$0xff] %v4431_v54  ;;  %v4434_v5 = vmax.f32 %v5256_v30, %v4386_v56 }
 0x387   : > { %4480 = vst [vmem:[%s6775_s13 + $0xc8] sm:$0xff] %v4432_v61  ;;  %v4433_v8 = vmax.f32 %v4329_v44, %v4385_v2  ;;  %v4435_v9 = vmax.f32 %v5257_v36, %v4387_v50  ;;  %v4388_v11 = vmul.f32 0.2, %v4332_v4  ;;  %v4136_v57 = vpop.f32.mrb[52].mxu0  ;;  %v5156_v12 = vpop.f32.mrb[84].mxu1 }
 0x388   : > { %4482 = vst [vmem:[%s6775_s13 + $0xd8] sm:$0xff] %v4434_v5  ;;  %v5258_v62 = vadd.f32 %v4136_v57, %v6758_v17  ;;  %v4138_v13 = vpop.f32.mrb[53].mxu0  ;;  %v5157_v15 = vpop.f32.mrb[85].mxu1 }
 0x389   : > { %4481 = vst [vmem:[%s6775_s13 + $0xd0] sm:$0xff] %v4433_v8  ;;  %4483 = vst [vmem:[%s6775_s13 + $0xe0] sm:$0xff] %v4435_v9  ;;  %v4436_v19 = vmax.f32 %v4332_v4, %v4388_v11  ;;  %v5259_v20 = vadd.f32 %v4138_v13, %v6766_v18  ;;  %v5158_v21 = vadd.f32 %v5157_v15, %v5156_v12  ;;  %v4140_v23 = vpop.f32.mrb[54].mxu0  ;;  %v5159_v0 = vpop.f32.mrb[86].mxu1 }
 0x38a   : > { %v4389_v25 = vmul.f32 0.2, %v5258_v62  ;;  %v5260_v52 = vadd.f32 %v4140_v23, %v6758_v17  ;;  %v4142_v26 = vpop.f32.mrb[55].mxu0  ;;  %v5160_v27 = vpop.f32.mrb[87].mxu1 }
 0x38b   : > { %4484 = vst [vmem:[%s6775_s13 + $0xe8] sm:$0xff] %v4436_v19  ;;  %v4390_v63 = vmul.f32 0.2, %v5259_v20  ;;  %v4337_v32 = vadd.f32 %v5158_v21, %v4240_v60  ;;  %v5261_v53 = vadd.f32 %v4142_v26, %v6766_v18  ;;  %v5161_v45 = vadd.f32 %v5160_v27, %v5159_v0 }
 0x38c   : > { %v4437_v42 = vmax.f32 %v5258_v62, %v4389_v25  ;;  %v4392_v51 = vmul.f32 0.2, %v5260_v52  ;;  %v4256_v19 = vadd.f32 %v6749_v58, %v6762_v59  ;;  %v4259_v25 = vadd.f32 %v6754_v16, %v6762_v59 }
 0x38d   : > { %v4438_v55 = vmax.f32 %v5259_v20, %v4390_v63  ;;  %v4391_v1 = vmul.f32 0.2, %v4337_v32  ;;  %v4393_v3 = vmul.f32 0.2, %v5261_v53  ;;  %v4340_v14 = vadd.f32 %v5161_v45, %v4243_v38 }
 0x38e   : > { %4485 = vst [vmem:[%s6775_s13 + $0xf0] sm:$0xff] %v4437_v42  ;;  %v4440_v6 = vmax.f32 %v5260_v52, %v4392_v51 }
 0x38f   : > { %4486 = vst [vmem:[%s6775_s13 + $0xf8] sm:$0xff] %v4438_v55  ;;  %v4439_v41 = vmax.f32 %v4337_v32, %v4391_v1  ;;  %v4441_v33 = vmax.f32 %v5261_v53, %v4393_v3  ;;  %v4394_v47 = vmul.f32 0.2, %v4340_v14  ;;  %v4146_v28 = vpop.f32.mrb[56].mxu0  ;;  %v5162_v24 = vpop.f32.mrb[88].mxu1 }
 0x390   : > { %4488 = vst [vmem:[%s6775_s13 + $0x108] sm:$0xff] %v4440_v6  ;;  %v5262_v29 = vadd.f32 %v4146_v28, %v6758_v17  ;;  %v4148_v34 = vpop.f32.mrb[57].mxu0  ;;  %v5163_v35 = vpop.f32.mrb[89].mxu1 }
 0x391   : > { %4487 = vst [vmem:[%s6775_s13 + $0x100] sm:$0xff] %v4439_v41  ;;  %4489 = vst [vmem:[%s6775_s13 + $0x110] sm:$0xff] %v4441_v33  ;;  %v4442_v31 = vmax.f32 %v4340_v14, %v4394_v47  ;;  %v5263_v22 = vadd.f32 %v4148_v34, %v6766_v18  ;;  %v5164_v37 = vadd.f32 %v5163_v35, %v5162_v24  ;;  %v4150_v39 = vpop.f32.mrb[58].mxu0  ;;  %v5165_v30 = vpop.f32.mrb[90].mxu1 }
 0x392   : > { %v4395_v46 = vmul.f32 0.2, %v5262_v29  ;;  %v5264_v40 = vadd.f32 %v4150_v39, %v6758_v17  ;;  %v4152_v44 = vpop.f32.mrb[59].mxu0  ;;  %v5166_v36 = vpop.f32.mrb[91].mxu1 }
 0x393   : > { %4490 = vst [vmem:[%s6775_s13 + $0x118] sm:$0xff] %v4442_v31  ;;  %v4396_v7 = vmul.f32 0.2, %v5263_v22  ;;  %v4345_v49 = vadd.f32 %v5164_v37, %v4248_v48  ;;  %v5265_v54 = vadd.f32 %v4152_v44, %v6766_v18  ;;  %v5167_v56 = vadd.f32 %v5166_v36, %v5165_v30 }
 0x394   : > { %v4443_v61 = vmax.f32 %v5262_v29, %v4395_v46  ;;  %v4398_v2 = vmul.f32 0.2, %v5264_v40 }
 0x395   : > { %v4444_v50 = vmax.f32 %v5263_v22, %v4396_v7  ;;  %v4397_v4 = vmul.f32 0.2, %v4345_v49  ;;  %v4399_v10 = vmul.f32 0.2, %v5265_v54  ;;  %v4348_v5 = vadd.f32 %v5167_v56, %v4251_v43 }
 0x396   : > { %4491 = vst [vmem:[%s6775_s13 + $0x120] sm:$0xff] %v4443_v61  ;;  %v4446_v8 = vmax.f32 %v5264_v40, %v4398_v2 }
 0x397   : > { %4492 = vst [vmem:[%s6775_s13 + $0x128] sm:$0xff] %v4444_v50  ;;  %v4445_v9 = vmax.f32 %v4345_v49, %v4397_v4  ;;  %v4447_v11 = vmax.f32 %v5265_v54, %v4399_v10  ;;  %v4400_v57 = vmul.f32 0.2, %v4348_v5  ;;  %v4156_v12 = vpop.f32.mrb[60].mxu0  ;;  %v5168_v62 = vpop.f32.mrb[92].mxu1 }
 0x398   : > { %4494 = vst [vmem:[%s6775_s13 + $0x138] sm:$0xff] %v4446_v8  ;;  %v5266_v13 = vadd.f32 %v4156_v12, %v6758_v17  ;;  %v4158_v15 = vpop.f32.mrb[61].mxu0  ;;  %v5169_v60 = vpop.f32.mrb[93].mxu1 }
 0x399   : > { %4493 = vst [vmem:[%s6775_s13 + $0x130] sm:$0xff] %v4445_v9  ;;  %4495 = vst [vmem:[%s6775_s13 + $0x140] sm:$0xff] %v4447_v11  ;;  %v4448_v20 = vmax.f32 %v4348_v5, %v4400_v57  ;;  %v5267_v21 = vadd.f32 %v4158_v15, %v6766_v18  ;;  %v5170_v23 = vadd.f32 %v5169_v60, %v5168_v62  ;;  %v4160_v0 = vpop.f32.mrb[62].mxu0  ;;  %v5171_v38 = vpop.f32.mrb[94].mxu1 }
 0x39a   : > { %v4401_v52 = vmul.f32 0.2, %v5266_v13  ;;  %v5268_v26 = vadd.f32 %v4160_v0, %v6758_v17  ;;  %v4162_v27 = vpop.f32.mrb[63].mxu0  ;;  %v5172_v63 = vpop.f32.mrb[95].mxu1 }
 0x39b   : > { %4496 = vst [vmem:[%s6775_s13 + $0x148] sm:$0xff] %v4448_v20  ;;  %v4402_v58 = vmul.f32 0.2, %v5267_v21  ;;  %v4353_v32 = vadd.f32 %v5170_v23, %v4256_v19  ;;  %v5269_v53 = vadd.f32 %v4162_v27, %v6766_v18  ;;  %v5173_v45 = vadd.f32 %v5172_v63, %v5171_v38 }
 0x39c   : > { %v4449_v42 = vmax.f32 %v5266_v13, %v4401_v52  ;;  %v4404_v51 = vmul.f32 0.2, %v5268_v26 }
 0x39d   : > { %v4450_v16 = vmax.f32 %v5267_v21, %v4402_v58  ;;  %v4403_v59 = vmul.f32 0.2, %v4353_v32  ;;  %v4405_v17 = vmul.f32 0.2, %v5269_v53  ;;  %v4356_v55 = vadd.f32 %v5173_v45, %v4259_v25 }
 0x39e   : > { %4497 = vst [vmem:[%s6775_s13 + $0x150] sm:$0xff] %v4449_v42  ;;  %v4452_v1 = vmax.f32 %v5268_v26, %v4404_v51 }
 0x39f   : > { %4498 = vst [vmem:[%s6775_s13 + $0x158] sm:$0xff] %v4450_v16  ;;  %v4451_v3 = vmax.f32 %v4353_v32, %v4403_v59  ;;  %v4453_v18 = vmax.f32 %v5269_v53, %v4405_v17  ;;  %v4406_v14 = vmul.f32 0.2, %v4356_v55 }
 0x3a0   : > { %4500 = vst [vmem:[%s6775_s13 + $0x168] sm:$0xff] %v4452_v1 }
 0x3a1   : > { %4499 = vst [vmem:[%s6775_s13 + $0x160] sm:$0xff] %v4451_v3  ;;  %4501 = vst [vmem:[%s6775_s13 + $0x170] sm:$0xff] %v4453_v18  ;;  %v4454_v6 = vmax.f32 %v4356_v55, %v4406_v14 }
 0x3a3   : > { %4502 = vst [vmem:[%s6775_s13 + $0x178] sm:$0xff] %v4454_v6 }
 0x3a4   : > { %6182 = shalt.err (!%p6179_p2)
}
 0x3a5   : > { %s6183_s24 = scalar_lea.hbm %s6883_s14, 6144  ;;  %s6187_s28 = scalar_lea.hbm %s6937_s5, 12288 }
 0x3a6   : > { %p6184_p13 = scmp.ne.s32.totalorder %s6883_s14, %s6183_s24  ;;  %p6188_p4 = scmp.lt.u32.totalorder %s6883_s14, %s6937_s5 }
 0x3a7   : > { %p6189_p7 = scmp.lt.u32.totalorder %s6187_s28, %s6183_s24  ;;  %p6191_p11 = scmp.lt.u32.totalorder %s6183_s24, %s6883_s14 }
 0x3a8   : > { %p6185_p6 = pnand %p6184_p13, %p6951_p0 }
 0x3a9   : > { %p6190_p8 = por %p6189_p7, %p6188_p4 }
 0x3aa   : > { %p6186_p10 = pneg %p6185_p6 }
 0x3ab   : > { %p6192_p1 = por %p6191_p11, %p6190_p8 }
 0x3ad   : > { %p6193_p3 = pnand %p6192_p1, %p6186_p10 }
 0x3af   : > { %6196 = shalt.err (!%p6193_p3)
}
 0x3b0   : > { %s6251_s29 = smov 384   ;;  %s6252_s9 = smov 24  }
 0x3b1   : > { %5506 = dma.vmem_to_hbm [thread:$0]  (%p6951_p0), %s6887_s8, 6144, %s6883_s14, %s4504_s22, %s6251_s29, %s6251_s29, %s6252_s9  }
 0x3b2 PF: > { %s4533_s11 = sand.u32 1, %s6227_s18   ;;  %p6952_p5 = scmp.ne.s32.totalorder %s6942_s25, 0 }
 0x3b3   : > { %p6953_p9 = scmp.ge.s32.totalorder %s6239_s21, 2  ;;  %s4534_s15 = scalar_lea.sflag [#allocation4], %s4533_s11 }
 0x3b5   : > { %p5520_p12 = pnand %p6953_p9, %p6952_p5 }
 0x3b7   : > { %6222 = dma.done.wait (!%p5520_p12), %s4534_s15, 6144  }
 0x3b8   : > { %6224 = vsyncadd (!%p5520_p12), %s4534_s15, 4294961152  ;;  %p19_p2 = scmp.ge.s32.totalorder %s6393_s16, 4   ;;  %s6954_s18 = smov %s6231_s19 }
 0x3b9   : > { %s6955_s19 = smov %s6235_s20  ;;  %s6956_s20 = smov %s6402_s27 }
 0x3ba   : > { %s6957_s21 = smov %s6393_s16  ;;  %21 = sbr.rel (!%p19_p2) target bundleno = 6 (0x6), region = 93 }
 0x3c1   :  { %4539 = vsyncpa [#allocation3], 1 }
 0x3c2   :  { %4541 = vsyncpa [#allocation3 + $0x1], 1 }
 0x3c3   :  { %4542 = vsyncpa [#allocation6], 1 }
 0x3c4   :  { %4543 = vsyncpa [#allocation4], 1 }
 0x3c5   :  { %4545 = vsyncpa [#allocation4 + $0x1], 1 }

</bundles_post_ra>
